<compile_context>
chip_gen: v5e
topology: v5e:2x2
jax: 0.10.0
libtpu: 0.0.40
codegen_flags: <defaults>
</compile_context>

<pallas_src>
import functools

import jax
import jax.numpy as jnp
from jax.experimental import pallas as pl
from jax.experimental.pallas import tpu as pltpu

EPS = 1e-5  # nn.BatchNorm2d default eps


# --------------------------------------------------------------------------
# In-kernel helpers
# --------------------------------------------------------------------------
def _conv3x3_packed(src, mask_ref, w_ref, xbuf_ref, cols_ref, W):
    """3x3 same-padding conv of one image as a single packed-K bf16 MXU matmul.

    src:      (Cin, H*W)        f32 activation, channel-major, row-major spatial
    mask_ref: (9, H*W)          f32 tap-validity masks (0 where tap leaves image)
    w_ref:    (Cout, 9*Cin)     bf16 packed weights (tap-major, cin-minor)
    xbuf_ref: (Cin, H*W+2*halo) f32 scratch, zero halo >= W+1, 128-lane aligned
    cols_ref: (9*Cin, H*W)      bf16 scratch (im2col matrix)
    returns:  (Cout, H*W)       f32
    """
    cin, hw = src.shape
    halo = (xbuf_ref.shape[1] - hw) // 2            # static, multiple of 128
    xbuf_ref[...] = jnp.zeros_like(xbuf_ref)        # keep zero halo every step
    xbuf_ref[:, halo:halo + hw] = src               # 128-aligned interior store
    for t in range(9):                              # static python -> unrolled
        dy, dx = divmod(t, 3)
        s = (dy - 1) * W + (dx - 1)                 # flat tap offset
        patch = xbuf_ref[:, halo + s:halo + s + hw] * mask_ref[t:t + 1, :]
        cols_ref[t * cin:(t + 1) * cin, :] = patch.astype(jnp.bfloat16)
    # One (Cout, 9*Cin) x (9*Cin, H*W) matmul: bf16 operands, f32 accumulation.
    return jnp.dot(w_ref[...], cols_ref[...], preferred_element_type=jnp.float32)


def _emit_bn_partials(stats_ref, acc):
    """Per-image per-channel (sum, sumsq) partials for two-pass batch norm."""
    stats_ref[0, :, 0:1] = jnp.sum(acc, axis=1, keepdims=True)
    stats_ref[0, :, 1:2] = jnp.sum(acc * acc, axis=1, keepdims=True)


# --------------------------------------------------------------------------
# Kernels (grid = (N,), one image per grid step)
# --------------------------------------------------------------------------
def _conv1_kernel(x_ref, w_ref, mask_ref, c1_ref, stats_ref,
                  xbuf_ref, cols_ref, *, W):
    acc = _conv3x3_packed(x_ref[0], mask_ref, w_ref, xbuf_ref, cols_ref, W)
    c1_ref[0] = acc.astype(jnp.bfloat16)            # lane-dense (H*W) store
    _emit_bn_partials(stats_ref, acc)


def _bn1_relu_conv2_kernel(c1_ref, sc1_ref, sh1_ref, w_ref, mask_ref,
                           c2_ref, stats_ref, xbuf_ref, cols_ref, *, W):
    # BN1 affine + ReLU in f32 on the VPU, then conv2 as packed-K bf16 matmul.
    h = c1_ref[0].astype(jnp.float32) * sc1_ref[...] + sh1_ref[...]
    h = jnp.maximum(h, 0.0)
    acc = _conv3x3_packed(h, mask_ref, w_ref, xbuf_ref, cols_ref, W)
    c2_ref[0] = acc.astype(jnp.bfloat16)
    _emit_bn_partials(stats_ref, acc)


def _bn2_relu_residual_kernel(c2_ref, x_ref, sc2_ref, sh2_ref, o_ref):
    y = c2_ref[0].astype(jnp.float32) * sc2_ref[...] + sh2_ref[...]
    y = jnp.maximum(y, 0.0)
    o_ref[0] = y + x_ref[0]                         # quant(residual) == residual


# --------------------------------------------------------------------------
# Host-side helpers / wrapper
# --------------------------------------------------------------------------
def _pack_w(w_oihw):
    """PyTorch OIHW (Cout,Cin,3,3) -> (Cout, 9*Cin) bf16, tap-major/cin-minor."""
    co, ci = w_oihw.shape[0], w_oihw.shape[1]
    return jnp.transpose(w_oihw, (0, 2, 3, 1)).reshape(co, 9 * ci).astype(jnp.bfloat16)


def _tap_masks(H, W):
    """(9, H*W) f32: 1 where tap (dy,dx) stays inside the image, else 0."""
    i = jnp.arange(H * W, dtype=jnp.int32)
    y, x = i // W, i % W
    rows = []
    for dy in range(3):
        for dx in range(3):
            ok = ((y + dy - 1 >= 0) & (y + dy - 1 < H) &
                  (x + dx - 1 >= 0) & (x + dx - 1 < W))
            rows.append(ok.astype(jnp.float32))
    return jnp.stack(rows, axis=0)


def _bn_scale_shift(stats, gamma, beta, count):
    """Fold per-image (sum,sumsq) partials into per-channel scale/shift (f32)."""
    total = jnp.sum(stats, axis=0)                              # (P, 2)
    mean = total[:, 0] / count
    var = jnp.maximum(total[:, 1] / count - mean * mean, 0.0)   # biased (train)
    scale = gamma * jax.lax.rsqrt(var + EPS)
    shift = beta - mean * scale
    return scale[:, None].astype(jnp.float32), shift[:, None].astype(jnp.float32)


def basic_block_forward(x_nchw, params):
    """BasicBlock forward.  x_nchw: (N,C,H,W) f32.
    params = (w1, g1, b1, w2, g2, b2), conv weights in PyTorch OIHW layout."""
    w1, g1, b1, w2, g2, b2 = params
    N, C, H, W = x_nchw.shape
    P = w1.shape[0]
    assert C == P, "downsample is None => inplanes must equal planes"
    HW = H * W
    halo = ((W + 1 + 127) // 128) * 128             # zero halo, 128-lane aligned
    count = float(N * HW)

    x_flat = x_nchw.reshape(N, C, HW)               # free view, no HBM pass
    w1p, w2p = _pack_w(w1), _pack_w(w2)
    masks = _tap_masks(H, W)

    cparams = pltpu.CompilerParams(
        dimension_semantics=("parallel",),          # batch axis -> both TCs on v7x
        vmem_limit_bytes=32 * 1024 * 1024)

    img_spec = pl.BlockSpec((1, P, HW), lambda n: (n, 0, 0))
    xin_spec = pl.BlockSpec((1, C, HW), lambda n: (n, 0, 0))
    stats_spec = pl.BlockSpec((1, P, 2), lambda n: (n, 0, 0))

    def full(a):                                    # small array, fully resident
        return pl.BlockSpec(a.shape, lambda n: (0,) * a.ndim)

    def conv_scratch(cin):
        return [pltpu.VMEM((cin, HW + 2 * halo), jnp.float32),   # flat halo buffer
                pltpu.VMEM((9 * cin, HW), jnp.bfloat16)]         # im2col matrix

    def conv_out():
        return (jax.ShapeDtypeStruct((N, P, HW), jnp.bfloat16),
                jax.ShapeDtypeStruct((N, P, 2), jnp.float32))

    # pass 1: conv1 + BN1 partial stats
    c1, st1 = pl.pallas_call(
        functools.partial(_conv1_kernel, W=W),
        grid=(N,),
        in_specs=[xin_spec, full(w1p), full(masks)],
        out_specs=(img_spec, stats_spec),
        out_shape=conv_out(),
        scratch_shapes=conv_scratch(C),
        compiler_params=cparams,
    )(x_flat, w1p, masks)
    sc1, sh1 = _bn_scale_shift(st1, g1, b1, count)

    # pass 2: BN1 affine + ReLU + conv2 + BN2 partial stats
    c2, st2 = pl.pallas_call(
        functools.partial(_bn1_relu_conv2_kernel, W=W),
        grid=(N,),
        in_specs=[img_spec, full(sc1), full(sh1), full(w2p), full(masks)],
        out_specs=(img_spec, stats_spec),
        out_shape=conv_out(),
        scratch_shapes=conv_scratch(P),
        compiler_params=cparams,
    )(c1, sc1, sh1, w2p, masks)
    sc2, sh2 = _bn_scale_shift(st2, g2, b2, count)

    # pass 3: BN2 affine + ReLU + residual add
    out = pl.pallas_call(
        _bn2_relu_residual_kernel,
        grid=(N,),
        in_specs=[img_spec, xin_spec, full(sc2), full(sh2)],
        out_specs=pl.BlockSpec((1, P, HW), lambda n: (n, 0, 0)),
        out_shape=jax.ShapeDtypeStruct((N, P, HW), jnp.float32),
        compiler_params=cparams,
    )(c2, x_flat, sc2, sh2)

    return out.reshape(N, P, H, W)                  # already NCHW, free reshape


def _reference_forward(x, params):
    """Pure-JAX reference with the same bf16-operand / f32-accumulate policy."""
    w1, g1, b1, w2, g2, b2 = params

    def conv(h, w):
        return jax.lax.conv_general_dilated(
            h.astype(jnp.bfloat16), w.astype(jnp.bfloat16),
            window_strides=(1, 1), padding=((1, 1), (1, 1)),
            dimension_numbers=("NCHW", "OIHW", "NCHW"),
            preferred_element_type=jnp.float32)

    def bn_relu(h, g, b):
        mean = jnp.mean(h, axis=(0, 2, 3), keepdims=True)
        var = jnp.mean((h - mean) ** 2, axis=(0, 2, 3), keepdims=True)
        y = (h - mean) * jax.lax.rsqrt(var + EPS)
        y = y * g.reshape(1, -1, 1, 1) + b.reshape(1, -1, 1, 1)
        return jnp.maximum(y, 0.0)

    h = bn_relu(conv(x, w1), g1, b1)
    h = bn_relu(conv(h, w2), g2, b2)
    return h + x          # relu(bn2(conv2)) + residual (quant == identity)


if __name__ == "__main__":
    key = jax.random.PRNGKey(0)
    N, C, H, W = 2, 4, 16, 16
    P = C                                           # stride=1, downsample=None
    ks = jax.random.split(key, 7)
    x = jax.random.normal(ks[0], (N, C, H, W), jnp.float32)
    # Conv weights in PyTorch OIHW layout (bias=False) + BN affine params.
    w1 = jax.random.normal(ks[1], (P, C, 3, 3), jnp.float32) / jnp.sqrt(9.0 * C)
    w2 = jax.random.normal(ks[2], (P, P, 3, 3), jnp.float32) / jnp.sqrt(9.0 * P)
    g1 = 1.0 + 0.1 * jax.random.normal(ks[3], (P,), jnp.float32)
    b1 = 0.1 * jax.random.normal(ks[4], (P,), jnp.float32)
    g2 = 1.0 + 0.1 * jax.random.normal(ks[5], (P,), jnp.float32)
    b2 = 0.1 * jax.random.normal(ks[6], (P,), jnp.float32)
    params = (w1, g1, b1, w2, g2, b2)

    out = jax.block_until_ready(jax.jit(basic_block_forward)(x, params))
    assert out.shape == (N, P, H, W)

    ref = jax.block_until_ready(_reference_forward(x, params))
    max_err = float(jnp.max(jnp.abs(out - ref)))
    assert max_err < 0.2, f"kernel/reference mismatch: max|diff|={max_err}"
    print("KERNEL_OK")
</pallas_src>

<mosaic_0001>
module attributes {stable_mosaic.version = 11 : i64} {
  func.func @_bn2_relu_residual_kernel(%arg0: i32, %arg1: memref<1x4x256xbf16, #tpu.memory_space<vmem>>, %arg2: memref<1x4x256xf32, #tpu.memory_space<vmem>>, %arg3: memref<4x1xf32, #tpu.memory_space<vmem>>, %arg4: memref<4x1xf32, #tpu.memory_space<vmem>>, %arg5: memref<1x4x256xf32, #tpu.memory_space<vmem>>) attributes {dimension_semantics = [#tpu.dimension_semantics<parallel>], iteration_bounds = array<i64: 2>, scalar_prefetch = 0 : i64, scratch_operands = 0 : i64, tpu.core_type = #tpu.core_type<tc>, window_params = [{transform_indices = @transform_0, window_bounds = array<i64: 1, 4, 256>}, {transform_indices = @transform_1, window_bounds = array<i64: 1, 4, 256>}, {pipeline_mode = #tpu.pipeline_mode<synchronous>, transform_indices = @transform_2, window_bounds = array<i64: 4, 1>}, {pipeline_mode = #tpu.pipeline_mode<synchronous>, transform_indices = @transform_3, window_bounds = array<i64: 4, 1>}, {transform_indices = @transform_4, window_bounds = array<i64: 1, 4, 256>}]} {
    %c0 = arith.constant 0 : index
    %c0_0 = arith.constant 0 : index
    %c0_1 = arith.constant 0 : index
    %0 = vector.load %arg1[%c0, %c0_0, %c0_1] : memref<1x4x256xbf16, #tpu.memory_space<vmem>>, vector<1x4x256xbf16>
    %1 = vector.shape_cast %0 : vector<1x4x256xbf16> to vector<4x256xbf16>
    %2 = arith.extf %1 : vector<4x256xbf16> to vector<4x256xf32>
    %c0_2 = arith.constant 0 : index
    %c0_3 = arith.constant 0 : index
    %3 = vector.load %arg3[%c0_2, %c0_3] : memref<4x1xf32, #tpu.memory_space<vmem>>, vector<4x1xf32>
    %4 = vector.broadcast %3 : vector<4x1xf32> to vector<4x256xf32>
    %5 = arith.mulf %2, %4 : vector<4x256xf32>
    %c0_4 = arith.constant 0 : index
    %c0_5 = arith.constant 0 : index
    %6 = vector.load %arg4[%c0_4, %c0_5] : memref<4x1xf32, #tpu.memory_space<vmem>>, vector<4x1xf32>
    %7 = vector.broadcast %6 : vector<4x1xf32> to vector<4x256xf32>
    %8 = arith.addf %5, %7 : vector<4x256xf32>
    %cst = arith.constant 0.000000e+00 : f32
    %9 = vector.broadcast %cst : f32 to vector<4x256xf32>
    %10 = arith.maximumf %8, %9 : vector<4x256xf32>
    %c0_6 = arith.constant 0 : index
    %c0_7 = arith.constant 0 : index
    %c0_8 = arith.constant 0 : index
    %11 = vector.load %arg2[%c0_6, %c0_7, %c0_8] : memref<1x4x256xf32, #tpu.memory_space<vmem>>, vector<1x4x256xf32>
    %12 = vector.shape_cast %11 : vector<1x4x256xf32> to vector<4x256xf32>
    %13 = arith.addf %10, %12 : vector<4x256xf32>
    %c0_9 = arith.constant 0 : index
    %c0_10 = arith.constant 0 : index
    %c0_11 = arith.constant 0 : index
    %14 = vector.load %arg5[%c0_9, %c0_10, %c0_11] : memref<1x4x256xf32, #tpu.memory_space<vmem>>, vector<1x4x256xf32>
    %15 = vector.shape_cast %14 : vector<1x4x256xf32> to vector<4x256xf32>
    %16 = vector.shape_cast %13 : vector<4x256xf32> to vector<1x4x256xf32>
    tpu.vector_store %arg5[%c0_9, %c0_10, %c0_11], %16 {strides = array<i32>} : memref<1x4x256xf32, #tpu.memory_space<vmem>>, vector<1x4x256xf32>,
    return
  }
  func.func @transform_0(%arg0: i32) -> (i32, i32, i32) {
    %c0_i32 = arith.constant 0 : i32
    %c0_i32_0 = arith.constant 0 : i32
    %c0_i32_1 = arith.constant 0 : i32
    return %arg0, %c0_i32, %c0_i32_0 : i32, i32, i32
  }
  func.func @transform_1(%arg0: i32) -> (i32, i32, i32) {
    %c0_i32 = arith.constant 0 : i32
    %c0_i32_0 = arith.constant 0 : i32
    %c0_i32_1 = arith.constant 0 : i32
    return %arg0, %c0_i32, %c0_i32_0 : i32, i32, i32
  }
  func.func @transform_2(%arg0: i32) -> (i32, i32) {
    %c0_i32 = arith.constant 0 : i32
    %c0_i32_0 = arith.constant 0 : i32
    %c0_i32_1 = arith.constant 0 : i32
    return %c0_i32, %c0_i32_0 : i32, i32
  }
  func.func @transform_3(%arg0: i32) -> (i32, i32) {
    %c0_i32 = arith.constant 0 : i32
    %c0_i32_0 = arith.constant 0 : i32
    %c0_i32_1 = arith.constant 0 : i32
    return %c0_i32, %c0_i32_0 : i32, i32
  }
  func.func @transform_4(%arg0: i32) -> (i32, i32, i32) {
    %c0_i32 = arith.constant 0 : i32
    %c0_i32_0 = arith.constant 0 : i32
    %c0_i32_1 = arith.constant 0 : i32
    return %arg0, %c0_i32, %c0_i32_0 : i32, i32, i32
  }
}

module attributes {stable_mosaic.version = 11 : i64} {
  func.func @_conv1_kernel(%arg0: i32, %arg1: memref<1x4x256xf32, #tpu.memory_space<vmem>>, %arg2: memref<4x36xbf16, #tpu.memory_space<vmem>>, %arg3: memref<9x256xf32, #tpu.memory_space<vmem>>, %arg4: memref<1x4x256xbf16, #tpu.memory_space<vmem>>, %arg5: memref<1x4x2xf32, #tpu.memory_space<vmem>>, %arg6: memref<4x512xf32, #tpu.memory_space<vmem>>, %arg7: memref<36x256xbf16, #tpu.memory_space<vmem>>) attributes {dimension_semantics = [#tpu.dimension_semantics<parallel>], iteration_bounds = array<i64: 2>, scalar_prefetch = 0 : i64, scratch_operands = 2 : i64, tpu.core_type = #tpu.core_type<tc>, window_params = [{transform_indices = @transform_0, window_bounds = array<i64: 1, 4, 256>}, {pipeline_mode = #tpu.pipeline_mode<synchronous>, transform_indices = @transform_1, window_bounds = array<i64: 4, 36>}, {pipeline_mode = #tpu.pipeline_mode<synchronous>, transform_indices = @transform_2, window_bounds = array<i64: 9, 256>}, {transform_indices = @transform_3, window_bounds = array<i64: 1, 4, 256>}, {transform_indices = @transform_4, window_bounds = array<i64: 1, 4, 2>}]} {
    %c0 = arith.constant 0 : index
    %c0_0 = arith.constant 0 : index
    %c0_1 = arith.constant 0 : index
    %0 = vector.load %arg1[%c0, %c0_0, %c0_1] : memref<1x4x256xf32, #tpu.memory_space<vmem>>, vector<1x4x256xf32>
    %1 = vector.shape_cast %0 : vector<1x4x256xf32> to vector<4x256xf32>
    %cst = arith.constant 0.000000e+00 : f32
    %2 = vector.broadcast %cst : f32 to vector<4x512xf32>
    %c0_2 = arith.constant 0 : index
    %c0_3 = arith.constant 0 : index
    %3 = vector.load %arg6[%c0_2, %c0_3] : memref<4x512xf32, #tpu.memory_space<vmem>>, vector<4x512xf32>
    tpu.vector_store %arg6[%c0_2, %c0_3], %2 {strides = array<i32>} : memref<4x512xf32, #tpu.memory_space<vmem>>, vector<4x512xf32>,
    %c0_4 = arith.constant 0 : index
    %c128 = arith.constant 128 : index
    %4 = vector.load %arg6[%c0_4, %c128] : memref<4x512xf32, #tpu.memory_space<vmem>>, vector<4x256xf32>
    tpu.vector_store %arg6[%c0_4, %c128], %1 {strides = array<i32>} : memref<4x512xf32, #tpu.memory_space<vmem>>, vector<4x256xf32>,
    %c0_5 = arith.constant 0 : index
    %c111 = arith.constant 111 : index
    %5 = vector.load %arg6[%c0_5, %c111] : memref<4x512xf32, #tpu.memory_space<vmem>>, vector<4x256xf32>
    %c0_6 = arith.constant 0 : index
    %c0_7 = arith.constant 0 : index
    %6 = vector.load %arg3[%c0_6, %c0_7] : memref<9x256xf32, #tpu.memory_space<vmem>>, vector<1x256xf32>
    %7 = vector.broadcast %6 : vector<1x256xf32> to vector<4x256xf32>
    %8 = arith.mulf %5, %7 : vector<4x256xf32>
    %9 = arith.truncf %8 : vector<4x256xf32> to vector<4x256xbf16>
    %c0_8 = arith.constant 0 : index
    %c0_9 = arith.constant 0 : index
    %10 = vector.load %arg7[%c0_8, %c0_9] : memref<36x256xbf16, #tpu.memory_space<vmem>>, vector<4x256xbf16>
    tpu.vector_store %arg7[%c0_8, %c0_9], %9 {strides = array<i32>} : memref<36x256xbf16, #tpu.memory_space<vmem>>, vector<4x256xbf16>,
    %c0_10 = arith.constant 0 : index
    %c112 = arith.constant 112 : index
    %11 = vector.load %arg6[%c0_10, %c112] : memref<4x512xf32, #tpu.memory_space<vmem>>, vector<4x256xf32>
    %c1 = arith.constant 1 : index
    %c0_11 = arith.constant 0 : index
    %12 = vector.load %arg3[%c1, %c0_11] : memref<9x256xf32, #tpu.memory_space<vmem>>, vector<1x256xf32>
    %13 = vector.broadcast %12 : vector<1x256xf32> to vector<4x256xf32>
    %14 = arith.mulf %11, %13 : vector<4x256xf32>
    %15 = arith.truncf %14 : vector<4x256xf32> to vector<4x256xbf16>
    %c4 = arith.constant 4 : index
    %c0_12 = arith.constant 0 : index
    %16 = vector.load %arg7[%c4, %c0_12] : memref<36x256xbf16, #tpu.memory_space<vmem>>, vector<4x256xbf16>
    tpu.vector_store %arg7[%c4, %c0_12], %15 {strides = array<i32>} : memref<36x256xbf16, #tpu.memory_space<vmem>>, vector<4x256xbf16>,
    %c0_13 = arith.constant 0 : index
    %c113 = arith.constant 113 : index
    %17 = vector.load %arg6[%c0_13, %c113] : memref<4x512xf32, #tpu.memory_space<vmem>>, vector<4x256xf32>
    %c2 = arith.constant 2 : index
    %c0_14 = arith.constant 0 : index
    %18 = vector.load %arg3[%c2, %c0_14] : memref<9x256xf32, #tpu.memory_space<vmem>>, vector<1x256xf32>
    %19 = vector.broadcast %18 : vector<1x256xf32> to vector<4x256xf32>
    %20 = arith.mulf %17, %19 : vector<4x256xf32>
    %21 = arith.truncf %20 : vector<4x256xf32> to vector<4x256xbf16>
    %c8 = arith.constant 8 : index
    %c0_15 = arith.constant 0 : index
    %22 = vector.load %arg7[%c8, %c0_15] : memref<36x256xbf16, #tpu.memory_space<vmem>>, vector<4x256xbf16>
    tpu.vector_store %arg7[%c8, %c0_15], %21 {strides = array<i32>} : memref<36x256xbf16, #tpu.memory_space<vmem>>, vector<4x256xbf16>,
    %c0_16 = arith.constant 0 : index
    %c127 = arith.constant 127 : index
    %23 = vector.load %arg6[%c0_16, %c127] : memref<4x512xf32, #tpu.memory_space<vmem>>, vector<4x256xf32>
    %c3 = arith.constant 3 : index
    %c0_17 = arith.constant 0 : index
    %24 = vector.load %arg3[%c3, %c0_17] : memref<9x256xf32, #tpu.memory_space<vmem>>, vector<1x256xf32>
    %25 = vector.broadcast %24 : vector<1x256xf32> to vector<4x256xf32>
    %26 = arith.mulf %23, %25 : vector<4x256xf32>
    %27 = arith.truncf %26 : vector<4x256xf32> to vector<4x256xbf16>
    %c12 = arith.constant 12 : index
    %c0_18 = arith.constant 0 : index
    %28 = vector.load %arg7[%c12, %c0_18] : memref<36x256xbf16, #tpu.memory_space<vmem>>, vector<4x256xbf16>
    tpu.vector_store %arg7[%c12, %c0_18], %27 {strides = array<i32>} : memref<36x256xbf16, #tpu.memory_space<vmem>>, vector<4x256xbf16>,
    %c0_19 = arith.constant 0 : index
    %c128_20 = arith.constant 128 : index
    %29 = vector.load %arg6[%c0_19, %c128_20] : memref<4x512xf32, #tpu.memory_space<vmem>>, vector<4x256xf32>
    %c4_21 = arith.constant 4 : index
    %c0_22 = arith.constant 0 : index
    %30 = vector.load %arg3[%c4_21, %c0_22] : memref<9x256xf32, #tpu.memory_space<vmem>>, vector<1x256xf32>
    %31 = vector.broadcast %30 : vector<1x256xf32> to vector<4x256xf32>
    %32 = arith.mulf %29, %31 : vector<4x256xf32>
    %33 = arith.truncf %32 : vector<4x256xf32> to vector<4x256xbf16>
    %c16 = arith.constant 16 : index
    %c0_23 = arith.constant 0 : index
    %34 = vector.load %arg7[%c16, %c0_23] : memref<36x256xbf16, #tpu.memory_space<vmem>>, vector<4x256xbf16>
    tpu.vector_store %arg7[%c16, %c0_23], %33 {strides = array<i32>} : memref<36x256xbf16, #tpu.memory_space<vmem>>, vector<4x256xbf16>,
    %c0_24 = arith.constant 0 : index
    %c129 = arith.constant 129 : index
    %35 = vector.load %arg6[%c0_24, %c129] : memref<4x512xf32, #tpu.memory_space<vmem>>, vector<4x256xf32>
    %c5 = arith.constant 5 : index
    %c0_25 = arith.constant 0 : index
    %36 = vector.load %arg3[%c5, %c0_25] : memref<9x256xf32, #tpu.memory_space<vmem>>, vector<1x256xf32>
    %37 = vector.broadcast %36 : vector<1x256xf32> to vector<4x256xf32>
    %38 = arith.mulf %35, %37 : vector<4x256xf32>
    %39 = arith.truncf %38 : vector<4x256xf32> to vector<4x256xbf16>
    %c20 = arith.constant 20 : index
    %c0_26 = arith.constant 0 : index
    %40 = vector.load %arg7[%c20, %c0_26] : memref<36x256xbf16, #tpu.memory_space<vmem>>, vector<4x256xbf16>
    tpu.vector_store %arg7[%c20, %c0_26], %39 {strides = array<i32>} : memref<36x256xbf16, #tpu.memory_space<vmem>>, vector<4x256xbf16>,
    %c0_27 = arith.constant 0 : index
    %c143 = arith.constant 143 : index
    %41 = vector.load %arg6[%c0_27, %c143] : memref<4x512xf32, #tpu.memory_space<vmem>>, vector<4x256xf32>
    %c6 = arith.constant 6 : index
    %c0_28 = arith.constant 0 : index
    %42 = vector.load %arg3[%c6, %c0_28] : memref<9x256xf32, #tpu.memory_space<vmem>>, vector<1x256xf32>
    %43 = vector.broadcast %42 : vector<1x256xf32> to vector<4x256xf32>
    %44 = arith.mulf %41, %43 : vector<4x256xf32>
    %45 = arith.truncf %44 : vector<4x256xf32> to vector<4x256xbf16>
    %c24 = arith.constant 24 : index
    %c0_29 = arith.constant 0 : index
    %46 = vector.load %arg7[%c24, %c0_29] : memref<36x256xbf16, #tpu.memory_space<vmem>>, vector<4x256xbf16>
    tpu.vector_store %arg7[%c24, %c0_29], %45 {strides = array<i32>} : memref<36x256xbf16, #tpu.memory_space<vmem>>, vector<4x256xbf16>,
    %c0_30 = arith.constant 0 : index
    %c144 = arith.constant 144 : index
    %47 = vector.load %arg6[%c0_30, %c144] : memref<4x512xf32, #tpu.memory_space<vmem>>, vector<4x256xf32>
    %c7 = arith.constant 7 : index
    %c0_31 = arith.constant 0 : index
    %48 = vector.load %arg3[%c7, %c0_31] : memref<9x256xf32, #tpu.memory_space<vmem>>, vector<1x256xf32>
    %49 = vector.broadcast %48 : vector<1x256xf32> to vector<4x256xf32>
    %50 = arith.mulf %47, %49 : vector<4x256xf32>
    %51 = arith.truncf %50 : vector<4x256xf32> to vector<4x256xbf16>
    %c28 = arith.constant 28 : index
    %c0_32 = arith.constant 0 : index
    %52 = vector.load %arg7[%c28, %c0_32] : memref<36x256xbf16, #tpu.memory_space<vmem>>, vector<4x256xbf16>
    tpu.vector_store %arg7[%c28, %c0_32], %51 {strides = array<i32>} : memref<36x256xbf16, #tpu.memory_space<vmem>>, vector<4x256xbf16>,
    %c0_33 = arith.constant 0 : index
    %c145 = arith.constant 145 : index
    %53 = vector.load %arg6[%c0_33, %c145] : memref<4x512xf32, #tpu.memory_space<vmem>>, vector<4x256xf32>
    %c8_34 = arith.constant 8 : index
    %c0_35 = arith.constant 0 : index
    %54 = vector.load %arg3[%c8_34, %c0_35] : memref<9x256xf32, #tpu.memory_space<vmem>>, vector<1x256xf32>
    %55 = vector.broadcast %54 : vector<1x256xf32> to vector<4x256xf32>
    %56 = arith.mulf %53, %55 : vector<4x256xf32>
    %57 = arith.truncf %56 : vector<4x256xf32> to vector<4x256xbf16>
    %c32 = arith.constant 32 : index
    %c0_36 = arith.constant 0 : index
    %58 = vector.load %arg7[%c32, %c0_36] : memref<36x256xbf16, #tpu.memory_space<vmem>>, vector<4x256xbf16>
    tpu.vector_store %arg7[%c32, %c0_36], %57 {strides = array<i32>} : memref<36x256xbf16, #tpu.memory_space<vmem>>, vector<4x256xbf16>,
    %c0_37 = arith.constant 0 : index
    %c0_38 = arith.constant 0 : index
    %59 = vector.load %arg2[%c0_37, %c0_38] : memref<4x36xbf16, #tpu.memory_space<vmem>>, vector<4x36xbf16>
    %c0_39 = arith.constant 0 : index
    %c0_40 = arith.constant 0 : index
    %60 = vector.load %arg7[%c0_39, %c0_40] : memref<36x256xbf16, #tpu.memory_space<vmem>>, vector<36x256xbf16>
    %cst_41 = arith.constant dense<0.000000e+00> : vector<4x256xf32>
    %61 = tpu.matmul %59, %60, %cst_41 {dimension_numbers = #tpu.dot_dimension_numbers<[1], [0], [0], [1], [0, 0, 1, 1], [], []>} : vector<4x36xbf16>, vector<36x256xbf16>, vector<4x256xf32> -> vector<4x256xf32>
    %62 = arith.truncf %61 : vector<4x256xf32> to vector<4x256xbf16>
    %c0_42 = arith.constant 0 : index
    %c0_43 = arith.constant 0 : index
    %c0_44 = arith.constant 0 : index
    %63 = vector.load %arg4[%c0_42, %c0_43, %c0_44] : memref<1x4x256xbf16, #tpu.memory_space<vmem>>, vector<1x4x256xbf16>
    %64 = vector.shape_cast %63 : vector<1x4x256xbf16> to vector<4x256xbf16>
    %65 = vector.shape_cast %62 : vector<4x256xbf16> to vector<1x4x256xbf16>
    tpu.vector_store %arg4[%c0_42, %c0_43, %c0_44], %65 {strides = array<i32>} : memref<1x4x256xbf16, #tpu.memory_space<vmem>>, vector<1x4x256xbf16>,
    %cst_45 = arith.constant dense<0.000000e+00> : vector<4xf32>
    %66 = vector.multi_reduction <add>, %61, %cst_45 [1] : vector<4x256xf32> to vector<4xf32>
    %67 = vector.shape_cast %66 : vector<4xf32> to vector<4x1xf32>
    %c0_46 = arith.constant 0 : index
    %c0_47 = arith.constant 0 : index
    %c0_48 = arith.constant 0 : index
    %68 = vector.load %arg5[%c0_46, %c0_47, %c0_48] : memref<1x4x2xf32, #tpu.memory_space<vmem>>, vector<1x4x1xf32>
    %69 = vector.shape_cast %68 : vector<1x4x1xf32> to vector<4x1xf32>
    %70 = vector.shape_cast %67 : vector<4x1xf32> to vector<1x4x1xf32>
    tpu.vector_store %arg5[%c0_46, %c0_47, %c0_48], %70 {strides = array<i32>} : memref<1x4x2xf32, #tpu.memory_space<vmem>>, vector<1x4x1xf32>,
    %71 = arith.mulf %61, %61 : vector<4x256xf32>
    %cst_49 = arith.constant dense<0.000000e+00> : vector<4xf32>
    %72 = vector.multi_reduction <add>, %71, %cst_49 [1] : vector<4x256xf32> to vector<4xf32>
    %73 = vector.shape_cast %72 : vector<4xf32> to vector<4x1xf32>
    %c0_50 = arith.constant 0 : index
    %c0_51 = arith.constant 0 : index
    %c1_52 = arith.constant 1 : index
    %74 = vector.load %arg5[%c0_50, %c0_51, %c1_52] : memref<1x4x2xf32, #tpu.memory_space<vmem>>, vector<1x4x1xf32>
    %75 = vector.shape_cast %74 : vector<1x4x1xf32> to vector<4x1xf32>
    %76 = vector.shape_cast %73 : vector<4x1xf32> to vector<1x4x1xf32>
    tpu.vector_store %arg5[%c0_50, %c0_51, %c1_52], %76 {strides = array<i32>} : memref<1x4x2xf32, #tpu.memory_space<vmem>>, vector<1x4x1xf32>,
    return
  }
  func.func @transform_0(%arg0: i32) -> (i32, i32, i32) {
    %c0_i32 = arith.constant 0 : i32
    %c0_i32_0 = arith.constant 0 : i32
    %c0_i32_1 = arith.constant 0 : i32
    return %arg0, %c0_i32, %c0_i32_0 : i32, i32, i32
  }
  func.func @transform_1(%arg0: i32) -> (i32, i32) {
    %c0_i32 = arith.constant 0 : i32
    %c0_i32_0 = arith.constant 0 : i32
    %c0_i32_1 = arith.constant 0 : i32
    return %c0_i32, %c0_i32_0 : i32, i32
  }
  func.func @transform_2(%arg0: i32) -> (i32, i32) {
    %c0_i32 = arith.constant 0 : i32
    %c0_i32_0 = arith.constant 0 : i32
    %c0_i32_1 = arith.constant 0 : i32
    return %c0_i32, %c0_i32_0 : i32, i32
  }
  func.func @transform_3(%arg0: i32) -> (i32, i32, i32) {
    %c0_i32 = arith.constant 0 : i32
    %c0_i32_0 = arith.constant 0 : i32
    %c0_i32_1 = arith.constant 0 : i32
    return %arg0, %c0_i32, %c0_i32_0 : i32, i32, i32
  }
  func.func @transform_4(%arg0: i32) -> (i32, i32, i32) {
    %c0_i32 = arith.constant 0 : i32
    %c0_i32_0 = arith.constant 0 : i32
    %c0_i32_1 = arith.constant 0 : i32
    return %arg0, %c0_i32, %c0_i32_0 : i32, i32, i32
  }
}

module attributes {stable_mosaic.version = 11 : i64} {
  func.func @_bn1_relu_conv2_kernel(%arg0: i32, %arg1: memref<1x4x256xbf16, #tpu.memory_space<vmem>>, %arg2: memref<4x1xf32, #tpu.memory_space<vmem>>, %arg3: memref<4x1xf32, #tpu.memory_space<vmem>>, %arg4: memref<4x36xbf16, #tpu.memory_space<vmem>>, %arg5: memref<9x256xf32, #tpu.memory_space<vmem>>, %arg6: memref<1x4x256xbf16, #tpu.memory_space<vmem>>, %arg7: memref<1x4x2xf32, #tpu.memory_space<vmem>>, %arg8: memref<4x512xf32, #tpu.memory_space<vmem>>, %arg9: memref<36x256xbf16, #tpu.memory_space<vmem>>) attributes {dimension_semantics = [#tpu.dimension_semantics<parallel>], iteration_bounds = array<i64: 2>, scalar_prefetch = 0 : i64, scratch_operands = 2 : i64, tpu.core_type = #tpu.core_type<tc>, window_params = [{transform_indices = @transform_0, window_bounds = array<i64: 1, 4, 256>}, {pipeline_mode = #tpu.pipeline_mode<synchronous>, transform_indices = @transform_1, window_bounds = array<i64: 4, 1>}, {pipeline_mode = #tpu.pipeline_mode<synchronous>, transform_indices = @transform_2, window_bounds = array<i64: 4, 1>}, {pipeline_mode = #tpu.pipeline_mode<synchronous>, transform_indices = @transform_3, window_bounds = array<i64: 4, 36>}, {pipeline_mode = #tpu.pipeline_mode<synchronous>, transform_indices = @transform_4, window_bounds = array<i64: 9, 256>}, {transform_indices = @transform_5, window_bounds = array<i64: 1, 4, 256>}, {transform_indices = @transform_6, window_bounds = array<i64: 1, 4, 2>}]} {
    %c0 = arith.constant 0 : index
    %c0_0 = arith.constant 0 : index
    %c0_1 = arith.constant 0 : index
    %0 = vector.load %arg1[%c0, %c0_0, %c0_1] : memref<1x4x256xbf16, #tpu.memory_space<vmem>>, vector<1x4x256xbf16>
    %1 = vector.shape_cast %0 : vector<1x4x256xbf16> to vector<4x256xbf16>
    %2 = arith.extf %1 : vector<4x256xbf16> to vector<4x256xf32>
    %c0_2 = arith.constant 0 : index
    %c0_3 = arith.constant 0 : index
    %3 = vector.load %arg2[%c0_2, %c0_3] : memref<4x1xf32, #tpu.memory_space<vmem>>, vector<4x1xf32>
    %4 = vector.broadcast %3 : vector<4x1xf32> to vector<4x256xf32>
    %5 = arith.mulf %2, %4 : vector<4x256xf32>
    %c0_4 = arith.constant 0 : index
    %c0_5 = arith.constant 0 : index
    %6 = vector.load %arg3[%c0_4, %c0_5] : memref<4x1xf32, #tpu.memory_space<vmem>>, vector<4x1xf32>
    %7 = vector.broadcast %6 : vector<4x1xf32> to vector<4x256xf32>
    %8 = arith.addf %5, %7 : vector<4x256xf32>
    %cst = arith.constant 0.000000e+00 : f32
    %9 = vector.broadcast %cst : f32 to vector<4x256xf32>
    %10 = arith.maximumf %8, %9 : vector<4x256xf32>
    %cst_6 = arith.constant 0.000000e+00 : f32
    %11 = vector.broadcast %cst_6 : f32 to vector<4x512xf32>
    %c0_7 = arith.constant 0 : index
    %c0_8 = arith.constant 0 : index
    %12 = vector.load %arg8[%c0_7, %c0_8] : memref<4x512xf32, #tpu.memory_space<vmem>>, vector<4x512xf32>
    tpu.vector_store %arg8[%c0_7, %c0_8], %11 {strides = array<i32>} : memref<4x512xf32, #tpu.memory_space<vmem>>, vector<4x512xf32>,
    %c0_9 = arith.constant 0 : index
    %c128 = arith.constant 128 : index
    %13 = vector.load %arg8[%c0_9, %c128] : memref<4x512xf32, #tpu.memory_space<vmem>>, vector<4x256xf32>
    tpu.vector_store %arg8[%c0_9, %c128], %10 {strides = array<i32>} : memref<4x512xf32, #tpu.memory_space<vmem>>, vector<4x256xf32>,
    %c0_10 = arith.constant 0 : index
    %c111 = arith.constant 111 : index
    %14 = vector.load %arg8[%c0_10, %c111] : memref<4x512xf32, #tpu.memory_space<vmem>>, vector<4x256xf32>
    %c0_11 = arith.constant 0 : index
    %c0_12 = arith.constant 0 : index
    %15 = vector.load %arg5[%c0_11, %c0_12] : memref<9x256xf32, #tpu.memory_space<vmem>>, vector<1x256xf32>
    %16 = vector.broadcast %15 : vector<1x256xf32> to vector<4x256xf32>
    %17 = arith.mulf %14, %16 : vector<4x256xf32>
    %18 = arith.truncf %17 : vector<4x256xf32> to vector<4x256xbf16>
    %c0_13 = arith.constant 0 : index
    %c0_14 = arith.constant 0 : index
    %19 = vector.load %arg9[%c0_13, %c0_14] : memref<36x256xbf16, #tpu.memory_space<vmem>>, vector<4x256xbf16>
    tpu.vector_store %arg9[%c0_13, %c0_14], %18 {strides = array<i32>} : memref<36x256xbf16, #tpu.memory_space<vmem>>, vector<4x256xbf16>,
    %c0_15 = arith.constant 0 : index
    %c112 = arith.constant 112 : index
    %20 = vector.load %arg8[%c0_15, %c112] : memref<4x512xf32, #tpu.memory_space<vmem>>, vector<4x256xf32>
    %c1 = arith.constant 1 : index
    %c0_16 = arith.constant 0 : index
    %21 = vector.load %arg5[%c1, %c0_16] : memref<9x256xf32, #tpu.memory_space<vmem>>, vector<1x256xf32>
    %22 = vector.broadcast %21 : vector<1x256xf32> to vector<4x256xf32>
    %23 = arith.mulf %20, %22 : vector<4x256xf32>
    %24 = arith.truncf %23 : vector<4x256xf32> to vector<4x256xbf16>
    %c4 = arith.constant 4 : index
    %c0_17 = arith.constant 0 : index
    %25 = vector.load %arg9[%c4, %c0_17] : memref<36x256xbf16, #tpu.memory_space<vmem>>, vector<4x256xbf16>
    tpu.vector_store %arg9[%c4, %c0_17], %24 {strides = array<i32>} : memref<36x256xbf16, #tpu.memory_space<vmem>>, vector<4x256xbf16>,
    %c0_18 = arith.constant 0 : index
    %c113 = arith.constant 113 : index
    %26 = vector.load %arg8[%c0_18, %c113] : memref<4x512xf32, #tpu.memory_space<vmem>>, vector<4x256xf32>
    %c2 = arith.constant 2 : index
    %c0_19 = arith.constant 0 : index
    %27 = vector.load %arg5[%c2, %c0_19] : memref<9x256xf32, #tpu.memory_space<vmem>>, vector<1x256xf32>
    %28 = vector.broadcast %27 : vector<1x256xf32> to vector<4x256xf32>
    %29 = arith.mulf %26, %28 : vector<4x256xf32>
    %30 = arith.truncf %29 : vector<4x256xf32> to vector<4x256xbf16>
    %c8 = arith.constant 8 : index
    %c0_20 = arith.constant 0 : index
    %31 = vector.load %arg9[%c8, %c0_20] : memref<36x256xbf16, #tpu.memory_space<vmem>>, vector<4x256xbf16>
    tpu.vector_store %arg9[%c8, %c0_20], %30 {strides = array<i32>} : memref<36x256xbf16, #tpu.memory_space<vmem>>, vector<4x256xbf16>,
    %c0_21 = arith.constant 0 : index
    %c127 = arith.constant 127 : index
    %32 = vector.load %arg8[%c0_21, %c127] : memref<4x512xf32, #tpu.memory_space<vmem>>, vector<4x256xf32>
    %c3 = arith.constant 3 : index
    %c0_22 = arith.constant 0 : index
    %33 = vector.load %arg5[%c3, %c0_22] : memref<9x256xf32, #tpu.memory_space<vmem>>, vector<1x256xf32>
    %34 = vector.broadcast %33 : vector<1x256xf32> to vector<4x256xf32>
    %35 = arith.mulf %32, %34 : vector<4x256xf32>
    %36 = arith.truncf %35 : vector<4x256xf32> to vector<4x256xbf16>
    %c12 = arith.constant 12 : index
    %c0_23 = arith.constant 0 : index
    %37 = vector.load %arg9[%c12, %c0_23] : memref<36x256xbf16, #tpu.memory_space<vmem>>, vector<4x256xbf16>
    tpu.vector_store %arg9[%c12, %c0_23], %36 {strides = array<i32>} : memref<36x256xbf16, #tpu.memory_space<vmem>>, vector<4x256xbf16>,
    %c0_24 = arith.constant 0 : index
    %c128_25 = arith.constant 128 : index
    %38 = vector.load %arg8[%c0_24, %c128_25] : memref<4x512xf32, #tpu.memory_space<vmem>>, vector<4x256xf32>
    %c4_26 = arith.constant 4 : index
    %c0_27 = arith.constant 0 : index
    %39 = vector.load %arg5[%c4_26, %c0_27] : memref<9x256xf32, #tpu.memory_space<vmem>>, vector<1x256xf32>
    %40 = vector.broadcast %39 : vector<1x256xf32> to vector<4x256xf32>
    %41 = arith.mulf %38, %40 : vector<4x256xf32>
    %42 = arith.truncf %41 : vector<4x256xf32> to vector<4x256xbf16>
    %c16 = arith.constant 16 : index
    %c0_28 = arith.constant 0 : index
    %43 = vector.load %arg9[%c16, %c0_28] : memref<36x256xbf16, #tpu.memory_space<vmem>>, vector<4x256xbf16>
    tpu.vector_store %arg9[%c16, %c0_28], %42 {strides = array<i32>} : memref<36x256xbf16, #tpu.memory_space<vmem>>, vector<4x256xbf16>,
    %c0_29 = arith.constant 0 : index
    %c129 = arith.constant 129 : index
    %44 = vector.load %arg8[%c0_29, %c129] : memref<4x512xf32, #tpu.memory_space<vmem>>, vector<4x256xf32>
    %c5 = arith.constant 5 : index
    %c0_30 = arith.constant 0 : index
    %45 = vector.load %arg5[%c5, %c0_30] : memref<9x256xf32, #tpu.memory_space<vmem>>, vector<1x256xf32>
    %46 = vector.broadcast %45 : vector<1x256xf32> to vector<4x256xf32>
    %47 = arith.mulf %44, %46 : vector<4x256xf32>
    %48 = arith.truncf %47 : vector<4x256xf32> to vector<4x256xbf16>
    %c20 = arith.constant 20 : index
    %c0_31 = arith.constant 0 : index
    %49 = vector.load %arg9[%c20, %c0_31] : memref<36x256xbf16, #tpu.memory_space<vmem>>, vector<4x256xbf16>
    tpu.vector_store %arg9[%c20, %c0_31], %48 {strides = array<i32>} : memref<36x256xbf16, #tpu.memory_space<vmem>>, vector<4x256xbf16>,
    %c0_32 = arith.constant 0 : index
    %c143 = arith.constant 143 : index
    %50 = vector.load %arg8[%c0_32, %c143] : memref<4x512xf32, #tpu.memory_space<vmem>>, vector<4x256xf32>
    %c6 = arith.constant 6 : index
    %c0_33 = arith.constant 0 : index
    %51 = vector.load %arg5[%c6, %c0_33] : memref<9x256xf32, #tpu.memory_space<vmem>>, vector<1x256xf32>
    %52 = vector.broadcast %51 : vector<1x256xf32> to vector<4x256xf32>
    %53 = arith.mulf %50, %52 : vector<4x256xf32>
    %54 = arith.truncf %53 : vector<4x256xf32> to vector<4x256xbf16>
    %c24 = arith.constant 24 : index
    %c0_34 = arith.constant 0 : index
    %55 = vector.load %arg9[%c24, %c0_34] : memref<36x256xbf16, #tpu.memory_space<vmem>>, vector<4x256xbf16>
    tpu.vector_store %arg9[%c24, %c0_34], %54 {strides = array<i32>} : memref<36x256xbf16, #tpu.memory_space<vmem>>, vector<4x256xbf16>,
    %c0_35 = arith.constant 0 : index
    %c144 = arith.constant 144 : index
    %56 = vector.load %arg8[%c0_35, %c144] : memref<4x512xf32, #tpu.memory_space<vmem>>, vector<4x256xf32>
    %c7 = arith.constant 7 : index
    %c0_36 = arith.constant 0 : index
    %57 = vector.load %arg5[%c7, %c0_36] : memref<9x256xf32, #tpu.memory_space<vmem>>, vector<1x256xf32>
    %58 = vector.broadcast %57 : vector<1x256xf32> to vector<4x256xf32>
    %59 = arith.mulf %56, %58 : vector<4x256xf32>
    %60 = arith.truncf %59 : vector<4x256xf32> to vector<4x256xbf16>
    %c28 = arith.constant 28 : index
    %c0_37 = arith.constant 0 : index
    %61 = vector.load %arg9[%c28, %c0_37] : memref<36x256xbf16, #tpu.memory_space<vmem>>, vector<4x256xbf16>
    tpu.vector_store %arg9[%c28, %c0_37], %60 {strides = array<i32>} : memref<36x256xbf16, #tpu.memory_space<vmem>>, vector<4x256xbf16>,
    %c0_38 = arith.constant 0 : index
    %c145 = arith.constant 145 : index
    %62 = vector.load %arg8[%c0_38, %c145] : memref<4x512xf32, #tpu.memory_space<vmem>>, vector<4x256xf32>
    %c8_39 = arith.constant 8 : index
    %c0_40 = arith.constant 0 : index
    %63 = vector.load %arg5[%c8_39, %c0_40] : memref<9x256xf32, #tpu.memory_space<vmem>>, vector<1x256xf32>
    %64 = vector.broadcast %63 : vector<1x256xf32> to vector<4x256xf32>
    %65 = arith.mulf %62, %64 : vector<4x256xf32>
    %66 = arith.truncf %65 : vector<4x256xf32> to vector<4x256xbf16>
    %c32 = arith.constant 32 : index
    %c0_41 = arith.constant 0 : index
    %67 = vector.load %arg9[%c32, %c0_41] : memref<36x256xbf16, #tpu.memory_space<vmem>>, vector<4x256xbf16>
    tpu.vector_store %arg9[%c32, %c0_41], %66 {strides = array<i32>} : memref<36x256xbf16, #tpu.memory_space<vmem>>, vector<4x256xbf16>,
    %c0_42 = arith.constant 0 : index
    %c0_43 = arith.constant 0 : index
    %68 = vector.load %arg4[%c0_42, %c0_43] : memref<4x36xbf16, #tpu.memory_space<vmem>>, vector<4x36xbf16>
    %c0_44 = arith.constant 0 : index
    %c0_45 = arith.constant 0 : index
    %69 = vector.load %arg9[%c0_44, %c0_45] : memref<36x256xbf16, #tpu.memory_space<vmem>>, vector<36x256xbf16>
    %cst_46 = arith.constant dense<0.000000e+00> : vector<4x256xf32>
    %70 = tpu.matmul %68, %69, %cst_46 {dimension_numbers = #tpu.dot_dimension_numbers<[1], [0], [0], [1], [0, 0, 1, 1], [], []>} : vector<4x36xbf16>, vector<36x256xbf16>, vector<4x256xf32> -> vector<4x256xf32>
    %71 = arith.truncf %70 : vector<4x256xf32> to vector<4x256xbf16>
    %c0_47 = arith.constant 0 : index
    %c0_48 = arith.constant 0 : index
    %c0_49 = arith.constant 0 : index
    %72 = vector.load %arg6[%c0_47, %c0_48, %c0_49] : memref<1x4x256xbf16, #tpu.memory_space<vmem>>, vector<1x4x256xbf16>
    %73 = vector.shape_cast %72 : vector<1x4x256xbf16> to vector<4x256xbf16>
    %74 = vector.shape_cast %71 : vector<4x256xbf16> to vector<1x4x256xbf16>
    tpu.vector_store %arg6[%c0_47, %c0_48, %c0_49], %74 {strides = array<i32>} : memref<1x4x256xbf16, #tpu.memory_space<vmem>>, vector<1x4x256xbf16>,
    %cst_50 = arith.constant dense<0.000000e+00> : vector<4xf32>
    %75 = vector.multi_reduction <add>, %70, %cst_50 [1] : vector<4x256xf32> to vector<4xf32>
    %76 = vector.shape_cast %75 : vector<4xf32> to vector<4x1xf32>
    %c0_51 = arith.constant 0 : index
    %c0_52 = arith.constant 0 : index
    %c0_53 = arith.constant 0 : index
    %77 = vector.load %arg7[%c0_51, %c0_52, %c0_53] : memref<1x4x2xf32, #tpu.memory_space<vmem>>, vector<1x4x1xf32>
    %78 = vector.shape_cast %77 : vector<1x4x1xf32> to vector<4x1xf32>
    %79 = vector.shape_cast %76 : vector<4x1xf32> to vector<1x4x1xf32>
    tpu.vector_store %arg7[%c0_51, %c0_52, %c0_53], %79 {strides = array<i32>} : memref<1x4x2xf32, #tpu.memory_space<vmem>>, vector<1x4x1xf32>,
    %80 = arith.mulf %70, %70 : vector<4x256xf32>
    %cst_54 = arith.constant dense<0.000000e+00> : vector<4xf32>
    %81 = vector.multi_reduction <add>, %80, %cst_54 [1] : vector<4x256xf32> to vector<4xf32>
    %82 = vector.shape_cast %81 : vector<4xf32> to vector<4x1xf32>
    %c0_55 = arith.constant 0 : index
    %c0_56 = arith.constant 0 : index
    %c1_57 = arith.constant 1 : index
    %83 = vector.load %arg7[%c0_55, %c0_56, %c1_57] : memref<1x4x2xf32, #tpu.memory_space<vmem>>, vector<1x4x1xf32>
    %84 = vector.shape_cast %83 : vector<1x4x1xf32> to vector<4x1xf32>
    %85 = vector.shape_cast %82 : vector<4x1xf32> to vector<1x4x1xf32>
    tpu.vector_store %arg7[%c0_55, %c0_56, %c1_57], %85 {strides = array<i32>} : memref<1x4x2xf32, #tpu.memory_space<vmem>>, vector<1x4x1xf32>,
    return
  }
  func.func @transform_0(%arg0: i32) -> (i32, i32, i32) {
    %c0_i32 = arith.constant 0 : i32
    %c0_i32_0 = arith.constant 0 : i32
    %c0_i32_1 = arith.constant 0 : i32
    return %arg0, %c0_i32, %c0_i32_0 : i32, i32, i32
  }
  func.func @transform_1(%arg0: i32) -> (i32, i32) {
    %c0_i32 = arith.constant 0 : i32
    %c0_i32_0 = arith.constant 0 : i32
    %c0_i32_1 = arith.constant 0 : i32
    return %c0_i32, %c0_i32_0 : i32, i32
  }
  func.func @transform_2(%arg0: i32) -> (i32, i32) {
    %c0_i32 = arith.constant 0 : i32
    %c0_i32_0 = arith.constant 0 : i32
    %c0_i32_1 = arith.constant 0 : i32
    return %c0_i32, %c0_i32_0 : i32, i32
  }
  func.func @transform_3(%arg0: i32) -> (i32, i32) {
    %c0_i32 = arith.constant 0 : i32
    %c0_i32_0 = arith.constant 0 : i32
    %c0_i32_1 = arith.constant 0 : i32
    return %c0_i32, %c0_i32_0 : i32, i32
  }
  func.func @transform_4(%arg0: i32) -> (i32, i32) {
    %c0_i32 = arith.constant 0 : i32
    %c0_i32_0 = arith.constant 0 : i32
    %c0_i32_1 = arith.constant 0 : i32
    return %c0_i32, %c0_i32_0 : i32, i32
  }
  func.func @transform_5(%arg0: i32) -> (i32, i32, i32) {
    %c0_i32 = arith.constant 0 : i32
    %c0_i32_0 = arith.constant 0 : i32
    %c0_i32_1 = arith.constant 0 : i32
    return %arg0, %c0_i32, %c0_i32_0 : i32, i32, i32
  }
  func.func @transform_6(%arg0: i32) -> (i32, i32, i32) {
    %c0_i32 = arith.constant 0 : i32
    %c0_i32_0 = arith.constant 0 : i32
    %c0_i32_1 = arith.constant 0 : i32
    return %arg0, %c0_i32, %c0_i32_0 : i32, i32, i32
  }
}

</mosaic_0001>

<bundles_post_ra>
// kernel: basic_block_forward.5
= control target key start
LH: loop header
LB: loop body
LE: loop exit
PB: predicated region body
PF: predicated region fallthrough
CT: control target
= control target key end

     0   :  { %s375_s15 = smov 0   ;;  %s401_s0 = inlined_call_operand.vmem [shape: bf16[2,4,256], index: 0, kind: input, shape index: {}]   ;;  %s402_s1 = inlined_call_operand.vmem [shape: f32[2,4,256], index: 1, kind: input, shape index: {}]   ;;  %s403_s2 = inlined_call_operand.vmem [shape: f32[4,1], index: 2, kind: input, shape index: {}]   ;;  %s404_s3 = inlined_call_operand.vmem [shape: f32[4,1], index: 3, kind: input, shape index: {}]   ;;  %s405_s4 = inlined_call_operand.vmem [shape: f32[2,4,256], index: 4, kind: output, shape index: {}]  }
   0x1 LB: > { %s313_s16 = sadd.s32 4294967295, %s346_s15   ;;  %p317_p0 = scmp.ge.s32.totalorder %s346_s15, 1  ;;  %s346_s15 = sphi %s375_s15, %s14_s15  }
   0x2   : > { %p172_p1 = scmp.lt.s32.totalorder %s346_s15, 3 }
   0x4   : > { %p173_p2 = pnand %p317_p0, %p172_p1 }
   0x5   : > { %p203_p3 = scmp.lt.s32.totalorder (!%p173_p2), %s313_s16, 1 }
   0x6   : > { %176 = sbr.rel (%p173_p2) target bundleno = 145 (0x91), region = 36 }
   0xb   : > { %v220_v0 = vld [vmem:[%s403_s2] sm:$0xf]  ;;  %v348_v1 = vmov 0   ;;  %s407_s16 = smov (!%p203_p3, %s313_s16), 1  ;;  %v349_v3 = vmov 839922192  }
   0xc   : > { %339 = vset.pattern.permute.xlu0 %v348_v1  ;;  %v231_v2 = vld [vmem:[%s404_s3] sm:$0xf]  ;;  %s326_s21 = sshll.u32 %s407_s16, 2  ;;  %v226_v4 = vunpack.c.l.s4 %v349_v3  ;;  %s327_s25 = sshll.u32 %s407_s16, 3 }
   0xd   : > { %223 = vperm.xlu0 %339, %v220_v0   ;;  %s207_s24 = scalar_lea.vmem %s401_s0, %s326_s21  ;;  %s212_s28 = scalar_lea.vmem %s402_s1, %s327_s25 }
   0xe   : > { %v227_v6 = vunpack.c.0.s8 %v226_v4  ;;  %v218_v7 = vld [vmem:[%s207_s24] sm:$0xf]  ;;  %s217_s5 = scalar_lea.vmem %s405_s4, %s327_s25 }
   0xf   : > { %v219_v8 = vunpack.c.l.bf16 %v218_v7  ;;  %v243_v14 = vld [vmem:[%s212_s28] sm:$0xff] }
  0x15   : > { %234 = vperm.xlu0 %339, %v231_v2  }
  0x7f   : > { %v224_v5 = vpop.permute.xlu0 %223 }
  0x80   : > { %v228_v9 = vperm.slane %v224_v5, %v227_v6 }
  0x82   : > { %v230_v11 = vmul.f32 %v228_v9, %v219_v8 }
  0x87   : > { %v235_v10 = vpop.permute.xlu0 %234 }
  0x88   : > { %v239_v12 = vperm.slane %v235_v10, %v227_v6 }
  0x8a   : > { %v241_v13 = vadd.f32 %v239_v12, %v230_v11 }
  0x8c   : > { %v242_v15 = vmax.f32 %v241_v13, 0.0 }
  0x8e   : > { %v244_v16 = vadd.f32 %v243_v14, %v242_v15 }
  0x90   : > { %245 = vst [vmem:[%s217_s5] sm:$0xff] %v244_v16 }
  0x91 PF: > { %s14_s15 = sadd.s32 1, %s346_s15  }
  0x92   : > { %p11_p4 = scmp.ge.s32.totalorder %s14_s15, 4  }
  0x94   :  { %13 = sbr.rel (!%p11_p4) target bundleno = 1 (0x1), region = 69 }

// kernel: basic_block_forward.4
= control target key start
LH: loop header
LB: loop body
LE: loop exit
PB: predicated region body
PF: predicated region fallthrough
CT: control target
= control target key end

     0   :  { %s967_s21 = smov 0   ;;  %s1134_s0 = inlined_call_operand.vmem [shape: bf16[2,4,256], index: 0, kind: input, shape index: {}]   ;;  %s1135_s1 = inlined_call_operand.vmem [shape: f32[4,1], index: 1, kind: input, shape index: {}]   ;;  %s1136_s2 = inlined_call_operand.vmem [shape: f32[4,1], index: 2, kind: input, shape index: {}]   ;;  %s1137_s3 = inlined_call_operand.vmem [shape: bf16[4,36], index: 3, kind: input, shape index: {}]   ;;  %s1138_s4 = inlined_call_operand.vmem [shape: f32[9,256], index: 4, kind: input, shape index: {}]   ;;  %s1139_s5 = inlined_call_operand.vmem [shape: bf16[2,4,256], index: 5, kind: output, shape index: {0}]   ;;  %s1140_s6 = inlined_call_operand.vmem [shape: f32[2,4,2], index: 6, kind: output, shape index: {1}]  }
   0x1 LB: > { %s849_s22 = sadd.s32 4294967295, %s919_s21   ;;  %p853_p0 = scmp.ge.s32.totalorder %s919_s21, 1  ;;  %s919_s21 = sphi %s967_s21, %s17_s21  }
   0x2   : > { %p215_p1 = scmp.lt.s32.totalorder %s919_s21, 3 }
   0x4   : > { %p216_p2 = pnand %p853_p0, %p215_p1 }
   0x5   : > { %s922_s7 = smov (!%p216_p2), 111   ;;  %s923_s18 = smov (!%p216_p2), 113  }
   0x6   : > { %219 = sbr.rel (%p216_p2) target bundleno = 624 (0x270), region = 40  ;;  %s924_s19 = smov (!%p216_p2), 112  }
   0x7   : > { %s925_s24 = smov (!%p216_p2), 1   ;;  %s926_s25 = smov (!%p216_p2), 127  }
   0x8   : > { %s927_s26 = smov (!%p216_p2), 15   ;;  %s928_s27 = smov (!%p216_p2), 17  }
   0x9   : > { %s929_s28 = smov (!%p216_p2), 16   ;;  %p249_p3 = scmp.lt.s32.totalorder (!%p216_p2), %s849_s22, 1 }
   0xb   : > { %v266_v0 = vld [vmem:[%s1135_s1] sm:$0xf]  ;;  %v921_v2 = vmov 0   ;;  %vm299_vm0 = vcmask 1043456   ;;  %v930_v43 = vmov 0.0   ;;  %s1142_s22 = smov (!%p249_p3, %s849_s22), 1 }
   0xc   : > { %v294_v1 = vld [vmem:[%s1138_s4] ss:$8 sm:$0x3]  ;;  %912 = vset.pattern.permute.xlu0 %v921_v2  ;;  %v859_v5 = vld [vmem:[%s1138_s4 + $0x1] ss:$8 sm:$0x3] }
   0xd   : > { %v296_v3 = vperm.slane %v294_v1, 0  ;;  %v297_v4 = vperm.slane %v294_v1, 1  ;;  %269 = vperm.xlu0 %912, %v266_v0   ;;  %v343_v7 = vperm.slane %v859_v5, 1  ;;  %v863_v8 = vld [vmem:[%s1138_s4 + $0x5] ss:$8 sm:$0x3] }
   0xe   : > { %v277_v10 = vld [vmem:[%s1136_s2] sm:$0xf]  ;;  %v864_v11 = vld [vmem:[%s1138_s4 + $0x6] ss:$8 sm:$0x3]  ;;  %v342_v12 = vperm.slane %v859_v5, 0 }
   0xf   : > { %v298_v6 = vrot.slane %v297_v4, 4  ;;  %v344_v13 = vrot.slane %v343_v7, 4  ;;  %v497_v14 = vperm.slane %v863_v8, 1  ;;  %v860_v15 = vld [vmem:[%s1138_s4 + $0x2] ss:$8 sm:$0x3] }
  0x10   : > { %v388_v16 = vperm.slane %v860_v15, 0  ;;  %v389_v17 = vperm.slane %v860_v15, 1  ;;  %v861_v18 = vld [vmem:[%s1138_s4 + $0x3] ss:$8 sm:$0x3]  ;;  %v496_v22 = vperm.slane %v863_v8, 0 }
  0x11   : > { %v300_v9 = vsel %vm299_vm0, %v296_v3, %v298_v6  ;;  %v433_v20 = vperm.slane %v861_v18, 1  ;;  %v345_v21 = vsel %vm299_vm0, %v342_v12, %v344_v13  ;;  %v498_v23 = vrot.slane %v497_v14, 4  ;;  %v866_v25 = vld [vmem:[%s1138_s4 + $0x10] ss:$8 sm:$0x3]  ;;  %289 = vst [vmem:[#allocation2] sm:$0xff] %v930_v43 }
  0x12   : > { %301 = vrot.lane.b32.xlu1 %v300_v9, %s922_s7  ;;  %v390_v19 = vrot.slane %v389_v17, 4  ;;  %v543_v24 = vperm.slane %v864_v11, 1  ;;  %v432_v27 = vperm.slane %v861_v18, 0  ;;  %v542_v30 = vperm.slane %v864_v11, 0  ;;  %290 = vst [vmem:[#allocation2 + $0x8] sm:$0xff] %v930_v43  ;;  %s1025_s29 = sshll.u32 %s1142_s22, 2 }
  0x13   : > { %v434_v28 = vrot.slane %v433_v20, 4  ;;  %v499_v29 = vsel %vm299_vm0, %v496_v22, %v498_v23  ;;  %v633_v32 = vperm.slane %v866_v25, 1  ;;  %v865_v33 = vld [vmem:[%s1138_s4 + $0x7] ss:$8 sm:$0x3]  ;;  %v632_v37 = vperm.slane %v866_v25, 0  ;;  %s253_s9 = scalar_lea.vmem %s1134_s0, %s1025_s29  ;;  %s258_s14 = scalar_lea.vmem %s1139_s5, %s1025_s29 }
  0x14   : > { %v391_v26 = vsel %vm299_vm0, %v388_v16, %v390_v19  ;;  %v544_v31 = vrot.slane %v543_v24, 4  ;;  %v587_v35 = vperm.slane %v865_v33, 1  ;;  %v586_v39 = vperm.slane %v865_v33, 0  ;;  %v264_v48 = vld [vmem:[%s253_s9] sm:$0xf]  ;;  %s262_s17 = scalar_lea.vmem %s1140_s6, %s1025_s29 }
  0x15   : > { %280 = vperm.xlu0 %912, %v277_v10   ;;  %392 = vrot.lane.b32.xlu2 %v391_v26, %s923_s18  ;;  %v435_v34 = vsel %vm299_vm0, %v432_v27, %v434_v28  ;;  %v634_v38 = vrot.slane %v633_v32, 4  ;;  %v931_v44 = vmov 839922192   ;;  %v265_v49 = vunpack.c.l.bf16 %v264_v48  ;;  %v862_v15 = vld [vmem:[%s1138_s4 + $0x4] ss:$8 sm:$0x3] }
  0x16   : > { %v545_v36 = vsel %vm299_vm0, %v542_v30, %v544_v31  ;;  %v588_v40 = vrot.slane %v587_v35, 4  ;;  %v272_v45 = vunpack.c.l.s4 %v931_v44  ;;  %vm304_vm1 = vcmask 908288  }
  0x17   : > { %v635_v41 = vsel %vm299_vm0, %v632_v37, %v634_v38  ;;  %vm349_vm2 = vcmask 916480   ;;  %vm395_vm3 = vcmask 924672   ;;  %vm439_vm4 = vcmask 1039360  }
  0x18   : > { %v589_v42 = vsel %vm299_vm0, %v586_v39, %v588_v40  ;;  %v273_v47 = vunpack.c.0.s8 %v272_v45  ;;  %v478_v22 = vperm.slane %v862_v15, 1  ;;  %v477_v25 = vperm.slane %v862_v15, 0 }
  0x19   : > { %v492_v33 = vld [vmem:[#allocation2 + $0xc] sm:$0xf]  ;;  %vm469_vm5 = vcmask 7168   ;;  %vm423_vm6 = vcmask 121856   ;;  %vm379_vm7 = vcmask 130048   ;;  %vm333_vm8 = vcmask 138240  }
  0x1a   : > { %346 = vrot.lane.b32.xlu1 %v345_v21, %s924_s19  ;;  %v479_v26 = vrot.slane %v478_v22, 4  ;;  %vm706_vm9 = vcmask 1041408   ;;  %vm702_vm10 = vcmask 293888   ;;  %vm752_vm11 = vcmask 3072  }
  0x1b   : > { %vm761_vm12 = vcmask 11272  }
  0x1d   : > { %500 = vrot.lane.b32.xlu0 %v499_v29, %s925_s24  ;;  %436 = vrot.lane.b32.xlu2 %v435_v34, %s926_s25  ;;  %v480_v34 = vsel %vm299_vm0, %v477_v25, %v479_v26 }
  0x22   : > { %546 = vrot.lane.b32.xlu1 %v545_v36, %s927_s26 }
  0x25   : > { %636 = vrot.lane.b32.xlu0 %v635_v41, %s928_s27  ;;  %590 = vrot.lane.b32.xlu2 %v589_v42, %s929_s28  ;;  %v538_v42 = vld [vmem:[#allocation2 + $0xc] sm:$0xf] }
  0x6f   : > { %v393_v1 = vpop.permute.xlu2 %392 }
  0x70   : > { %v394_v4 = vrot.slane %v393_v1, 4 }
  0x72   : > { %v396_v12 = vsel %vm395_vm3, %v394_v4, %v393_v1  ;;  %v628_v1 = vld [vmem:[#allocation2 + $0xc] sm:$0xf] }
  0x77   : > { %v437_v14 = vpop.permute.xlu2 %436 }
  0x78   : > { %v438_v16 = vrot.slane %v437_v14, 4 }
  0x7a   : > { %v440_v23 = vsel %vm439_vm4, %v438_v16, %v437_v14 }
  0x7f   : > { %v270_v46 = vpop.permute.xlu0 %269 }
  0x80   : > { %v274_v50 = vperm.slane %v270_v46, %v273_v47 }
  0x82   : > { %v276_v52 = vmul.f32 %v274_v50, %v265_v49  ;;  %v591_v49 = vpop.permute.xlu2 %590 }
  0x84   : > { %v302_v55 = vpop.permute.xlu1 %301 }
  0x85   : > { %v303_v57 = vrot.slane %v302_v55, 4 }
  0x87   : > { %v281_v51 = vpop.permute.xlu0 %280  ;;  %v305_v58 = vsel %vm304_vm1, %v303_v57, %v302_v55 }
  0x88   : > { %v285_v53 = vperm.slane %v281_v51, %v273_v47 }
  0x8a   : > { %v287_v54 = vadd.f32 %v285_v53, %v276_v52  ;;  %v582_v53 = vld [vmem:[#allocation2 + $0xc] sm:$0xf] }
  0x8c   : > { %v1031_v56 = vmax.f32 %v287_v54, 0.0  ;;  %v347_v61 = vpop.permute.xlu1 %346  ;;  %v592_v54 = vrot.slane %v591_v49, 4 }
  0x8d   : > { %v348_v0 = vrot.slane %v347_v61, 4 }
  0x8e   : > { %291 = vst [vmem:[#allocation2 + $0x4] sm:$0xff] %v1031_v56  ;;  %v482_v37 = vmul.f32 %v480_v34, %v1031_v56 }
  0x8f   : > { %v350_v2 = vsel %vm349_vm2, %v348_v0, %v347_v61  ;;  %v501_v32 = vpop.permute.xlu0 %500 }
  0x90   : > { %v502_v35 = vrot.slane %v501_v32, 4 }
  0x92   : > { %v508_v36 = vmul.f32 %v502_v35, %v492_v33  ;;  %v504_v43 = vsel %vm469_vm5, %v502_v35, %v501_v32 }
  0x93   : > { %v507_v46 = vmul.f32 %v504_v43, %v1031_v56 }
  0x94   : > { %v547_v41 = vpop.permute.xlu1 %546 }
  0x95   : > { %v427_v59 = vld [vmem:[#allocation2] sm:$0xff]  ;;  %v293_v60 = vld [vmem:[#allocation2 + $0x8] sm:$0xf]  ;;  %v548_v44 = vrot.slane %v547_v41, 4 }
  0x96   : > { %v308_v62 = vmul.f32 %v427_v59, %v305_v58  ;;  %v309_v63 = vmul.f32 %v303_v57, %v293_v60  ;;  %v338_v3 = vld [vmem:[#allocation2 + $0x8] sm:$0xf]  ;;  %v353_v5 = vmul.f32 %v427_v59, %v350_v2  ;;  %v399_v17 = vmul.f32 %v427_v59, %v396_v12 }
  0x97   : > { %v354_v8 = vmul.f32 %v348_v0, %v338_v3  ;;  %v384_v13 = vld [vmem:[#allocation2 + $0x8] sm:$0xf]  ;;  %v443_v27 = vmul.f32 %v440_v23, %v427_v59  ;;  %v554_v45 = vmul.f32 %v548_v44, %v538_v42  ;;  %v550_v55 = vsel %vm423_vm6, %v548_v44, %v547_v41 }
  0x98   : > { %312 = vst [vmem:[#allocation1] ss:$2 sm:$0xff] %v308_v62  ;;  %v400_v20 = vmul.f32 %v394_v4, %v384_v13  ;;  %v428_v24 = vld [vmem:[#allocation2 + $0x8] sm:$0xf]  ;;  %v598_v58 = vmul.f32 %v592_v54, %v582_v53  ;;  %v553_v59 = vmul.f32 %v550_v55, %v1031_v56  ;;  %v637_v62 = vpop.permute.xlu0 %636  ;;  %v594_v2 = vsel %vm379_vm7, %v592_v54, %v591_v49 }
  0x99   : > { %314 = vst [vmem:[#allocation1 + $0x10] ss:$2 sm:$0xff] %v309_v63  ;;  %v444_v28 = vmul.f32 %v438_v16, %v428_v24  ;;  %v638_v3 = vrot.slane %v637_v62, 4 }
  0x9b   : > { %v644_v4 = vmul.f32 %v638_v3, %v628_v1  ;;  %v640_v13 = vsel %vm333_vm8, %v638_v3, %v637_v62 }
  0x9c   : > { %v643_v15 = vmul.f32 %v640_v13, %v1031_v56 }
  0x9f   : > { %v315_v6 = vld.sshfl [vmem:[#allocation1] sm:$0xff pattern:$0x75316420]  ;;  %v316_v7 = vld.sshfl [vmem:[#allocation1 + $0x8] sm:$0xff pattern:$0x75316420] }
  0xa0   : > { %v317_v9 = vld.sshfl [vmem:[#allocation1 + $0x10] sm:$0xff pattern:$0x75316420]  ;;  %357 = vst [vmem:[#allocation1] ss:$2 sm:$0xff] %v353_v5  ;;  %v321_v10 = vpack.c.bf16 %v316_v7, %v315_v6  ;;  %v597_v6 = vmul.f32 %v594_v2, %v1031_v56 }
  0xa1   : > { %359 = vst [vmem:[#allocation1 + $0x10] ss:$2 sm:$0xff] %v354_v8  ;;  %v322_v11 = vpack.c.bf16 %v317_v9, %v317_v9 }
  0xa2   : > { %325 = vrot.lane.b32.xlu0 %v321_v10, %s928_s27 }
  0xa3   : > { %327 = vrot.lane.b32.xlu1 %v322_v11, %s928_s27 }
  0xa7   : > { %v1042_v18 = vld.sshfl [vmem:[#allocation1] sm:$0xff pattern:$0x75316420]  ;;  %v1044_v19 = vld.sshfl [vmem:[#allocation1 + $0x8] sm:$0xff pattern:$0x75316420] }
  0xa8   : > { %v1046_v21 = vld.sshfl [vmem:[#allocation1 + $0x10] sm:$0xff pattern:$0x75316420]  ;;  %403 = vst [vmem:[#allocation1] ss:$2 sm:$0xff] %v399_v17  ;;  %v366_v33 = vpack.c.bf16 %v1044_v19, %v1042_v18 }
  0xa9   : > { %405 = vst [vmem:[#allocation1 + $0x10] ss:$2 sm:$0xff] %v400_v20  ;;  %v367_v14 = vpack.c.bf16 %v1046_v21, %v1046_v21 }
  0xaa   : > { %v370_v34 = vrot.slane %v366_v33, 6 }
  0xab   : > { %v371_v23 = vrot.slane %v367_v14, 6 }
  0xaf   : > { %v1049_v29 = vld.sshfl [vmem:[#allocation1] sm:$0xff pattern:$0x75316420]  ;;  %v1051_v30 = vld.sshfl [vmem:[#allocation1 + $0x8] sm:$0xff pattern:$0x75316420] }
  0xb0   : > { %v1053_v31 = vld.sshfl [vmem:[#allocation1 + $0x10] sm:$0xff pattern:$0x75316420]  ;;  %447 = vst [vmem:[#allocation1] ss:$2 sm:$0xff] %v443_v27  ;;  %v412_v35 = vpack.c.bf16 %v1051_v30, %v1049_v29 }
  0xb1   : > { %449 = vst [vmem:[#allocation1 + $0x10] ss:$2 sm:$0xff] %v444_v28 }
  0xb7   : > { %v1057_v38 = vld.sshfl [vmem:[#allocation1] sm:$0xff pattern:$0x75316420]  ;;  %v1059_v39 = vld.sshfl [vmem:[#allocation1 + $0x8] sm:$0xff pattern:$0x75316420] }
  0xb8   : > { %484 = vst [vmem:[#allocation1] ss:$2 sm:$0xff] %v482_v37  ;;  %v1061_v40 = vld.sshfl [vmem:[#allocation1 + $0x10] sm:$0xff pattern:$0x75316420]  ;;  %v456_v26 = vpack.c.bf16 %v1059_v39, %v1057_v38  ;;  %v413_v37 = vpack.c.bf16 %v1053_v31, %v1053_v31 }
  0xb9   : > { %513 = vst [vmem:[#allocation1 + $0x10] ss:$2 sm:$0xff] %v508_v36  ;;  %v457_v36 = vpack.c.bf16 %v1061_v40, %v1061_v40 }
  0xba   : > { %v460_v28 = vrot.slane %v456_v26, 6 }
  0xbb   : > { %v461_v38 = vrot.slane %v457_v36, 6 }
  0xbf   : > { %v485_v47 = vld.sshfl [vmem:[#allocation1] sm:$0xff pattern:$0x75316420]  ;;  %v486_v48 = vld.sshfl [vmem:[#allocation1 + $0x8] sm:$0xff pattern:$0x75316420] }
  0xc0   : > { %511 = vst [vmem:[#allocation1] ss:$2 sm:$0xff] %v507_v46  ;;  %v516_v50 = vld.sshfl [vmem:[#allocation1 + $0x10] sm:$0xff pattern:$0x75316420]  ;;  %v489_v51 = vpack.c.bf16 %v486_v48, %v485_v47 }
  0xc1   : > { %559 = vst [vmem:[#allocation1 + $0x10] ss:$2 sm:$0xff] %v554_v45  ;;  %v521_v52 = vpack.c.bf16 %v516_v50, %v516_v50 }
  0xc2   : > { %490 = vst [vmem:[#allocation3 + $0x10] sm:$0x33] %v489_v51 }
  0xc3   : > { %v525_v57 = vrot.slane %v521_v52, 6 }
  0xc5   : > { %528 = vrot.lane.b32.xlu1 %v525_v57, %s926_s25 }
  0xc7   : > { %v514_v60 = vld.sshfl [vmem:[#allocation1] sm:$0xff pattern:$0x75316420]  ;;  %v515_v61 = vld.sshfl [vmem:[#allocation1 + $0x8] sm:$0xff pattern:$0x75316420] }
  0xc8   : > { %v562_v63 = vld.sshfl [vmem:[#allocation1 + $0x10] sm:$0xff pattern:$0x75316420]  ;;  %557 = vst [vmem:[#allocation1] ss:$2 sm:$0xff] %v553_v59  ;;  %v520_v5 = vpack.c.bf16 %v515_v61, %v514_v60 }
  0xc9   : > { %v567_v0 = vpack.c.bf16 %v562_v63, %v562_v63  ;;  %603 = vst [vmem:[#allocation1 + $0x10] ss:$2 sm:$0xff] %v598_v58 }
  0xca   : > { %v524_v11 = vrot.slane %v520_v5, 6 }
  0xcb   : > { %572 = vrot.lane.b32.xlu0 %v567_v0, %s923_s18 }
  0xcf   : > { %v560_v7 = vld.sshfl [vmem:[#allocation1] sm:$0xff pattern:$0x75316420]  ;;  %v561_v8 = vld.sshfl [vmem:[#allocation1 + $0x8] sm:$0xff pattern:$0x75316420] }
  0xd0   : > { %v566_v9 = vpack.c.bf16 %v561_v8, %v560_v7  ;;  %601 = vst [vmem:[#allocation1] ss:$2 sm:$0xff] %v597_v6  ;;  %v606_v10 = vld.sshfl [vmem:[#allocation1 + $0x10] sm:$0xff pattern:$0x75316420] }
  0xd1   : > { %649 = vst [vmem:[#allocation1 + $0x10] ss:$2 sm:$0xff] %v644_v4  ;;  %v611_v12 = vpack.c.bf16 %v606_v10, %v606_v10 }
  0xd2   : > { %570 = vrot.lane.b32.xlu2 %v566_v9, %s923_s18 }
  0xd3   : > { %526 = vrot.lane.b32.xlu0 %v524_v11, %s926_s25  ;;  %v615_v16 = vrot.slane %v611_v12, 6 }
  0xd7   : > { %v604_v17 = vld.sshfl [vmem:[#allocation1] sm:$0xff pattern:$0x75316420]  ;;  %v605_v20 = vld.sshfl [vmem:[#allocation1 + $0x8] sm:$0xff pattern:$0x75316420] }
  0xd8   : > { %v610_v22 = vpack.c.bf16 %v605_v20, %v604_v17  ;;  %647 = vst [vmem:[#allocation1] ss:$2 sm:$0xff] %v643_v15  ;;  %v652_v25 = vld.sshfl [vmem:[#allocation1 + $0x10] sm:$0xff pattern:$0x75316420] }
  0xd9   : > { %v657_v21 = vpack.c.bf16 %v652_v25, %v652_v25 }
  0xda   : > { %618 = vrot.lane.b32.xlu2 %v615_v16, %s924_s19  ;;  %v614_v24 = vrot.slane %v610_v22, 6 }
  0xdb   : > { %374 = vrot.lane.b32.xlu0 %v371_v23, %s929_s28 }
  0xdc   : > { %616 = vrot.lane.b32.xlu1 %v614_v24, %s924_s19 }
  0xdf   : > { %v650_v27 = vld.sshfl [vmem:[#allocation1] sm:$0xff pattern:$0x75316420]  ;;  %v651_v56 = vld.sshfl [vmem:[#allocation1 + $0x8] sm:$0xff pattern:$0x75316420] }
  0xe0   : > { %v656_v32 = vpack.c.bf16 %v651_v56, %v650_v27 }
  0xe2   : > { %662 = vrot.lane.b32.xlu2 %v657_v21, %s922_s7 }
  0xe3   : > { %462 = vrot.lane.b32.xlu0 %v460_v28, %s925_s24 }
  0xe4   : > { %660 = vrot.lane.b32.xlu1 %v656_v32, %s922_s7 }
  0xea   : > { %372 = vrot.lane.b32.xlu2 %v370_v34, %s929_s28 }
  0xec   : > { %416 = vrot.lane.b32.xlu1 %v412_v35, %s927_s26 }
  0xf2   : > { %418 = vrot.lane.b32.xlu2 %v413_v37, %s927_s26 }
  0xf4   : > { %464 = vrot.lane.b32.xlu1 %v461_v38, %s925_s24 }
 0x114   : > { %v326_v18 = vpop.permute.xlu0 %325 }
 0x115   : > { %v328_v19 = vpop.permute.xlu1 %327  ;;  %v329_v39 = vrot.slane %v326_v18, 4 }
 0x116   : > { %v330_v41 = vrot.slane %v328_v19, 4 }
 0x118   : > { %v332_v42 = vsel %vm299_vm0, %v329_v39, %v330_v41  ;;  %v671_v41 = vld [vmem:[%s1137_s3] sm:$0x3] }
 0x119   : > { %v334_v29 = vsel %vm333_vm8, %v326_v18, %v332_v42 }
 0x11a   : > { %336 = vst [vmem:[#allocation3] sm:$0x33] %v334_v29 }
 0x12c   : > { %v571_v30 = vpop.permute.xlu2 %570 }
 0x12d   : > { %v574_v44 = vrot.slane %v571_v30, 4 }
 0x134   : > { %v619_v43 = vpop.permute.xlu2 %618 }
 0x135   : > { %v621_v60 = vrot.slane %v619_v43, 4 }
 0x137   : > { %v529_v48 = vpop.permute.xlu1 %528 }
 0x138   : > { %v531_v50 = vrot.slane %v529_v48, 4 }
 0x13c   : > { %v663_v46 = vpop.permute.xlu2 %662 }
 0x13d   : > { %v573_v40 = vpop.permute.xlu0 %572  ;;  %v665_v3 = vrot.slane %v663_v46, 4 }
 0x13e   : > { %v575_v45 = vrot.slane %v573_v40, 4 }
 0x140   : > { %v576_v31 = vsel %vm299_vm0, %v574_v44, %v575_v45 }
 0x141   : > { %v578_v47 = vsel %vm395_vm3, %v571_v30, %v576_v31 }
 0x142   : > { %580 = vst [vmem:[#allocation3 + $0x18] sm:$0x33] %v578_v47 }
 0x144   : > { %v373_v54 = vpop.permute.xlu2 %372 }
 0x145   : > { %v527_v49 = vpop.permute.xlu0 %526  ;;  %v376_v57 = vrot.slane %v373_v54, 4 }
 0x146   : > { %v530_v51 = vrot.slane %v527_v49, 4 }
 0x148   : > { %v532_v52 = vsel %vm299_vm0, %v530_v51, %v531_v50 }
 0x149   : > { %v534_v53 = vsel %vm439_vm4, %v527_v49, %v532_v52 }
 0x14a   : > { %536 = vst [vmem:[#allocation3 + $0x10] sm:$0xcc] %v534_v53 }
 0x14c   : > { %v419_v7 = vpop.permute.xlu2 %418 }
 0x14d   : > { %v375_v55 = vpop.permute.xlu0 %374  ;;  %v421_v9 = vrot.slane %v419_v7, 4 }
 0x14e   : > { %v377_v58 = vrot.slane %v375_v55, 4  ;;  %v617_v59 = vpop.permute.xlu1 %616 }
 0x14f   : > { %v620_v61 = vrot.slane %v617_v59, 4 }
 0x150   : > { %v378_v62 = vsel %vm299_vm0, %v376_v57, %v377_v58 }
 0x151   : > { %v380_v63 = vsel %vm379_vm7, %v373_v54, %v378_v62  ;;  %v622_v0 = vsel %vm299_vm0, %v620_v61, %v621_v60  ;;  %v877_v28 = vld [vmem:[#allocation3 + $0x10] sm:$0xf]  ;;  %v891_v32 = vld [vmem:[#allocation3 + $0x14] sm:$0xf] }
 0x152   : > { %382 = vst [vmem:[#allocation3] sm:$0xcc] %v380_v63  ;;  %v624_v1 = vsel %vm349_vm2, %v617_v59, %v622_v0 }
 0x153   : > { %626 = vst [vmem:[#allocation3 + $0x18] sm:$0xcc] %v624_v1 }
 0x155   : > { %v463_v16 = vpop.permute.xlu0 %462 }
 0x156   : > { %v661_v2 = vpop.permute.xlu1 %660  ;;  %v466_v24 = vrot.slane %v463_v16, 4 }
 0x157   : > { %v664_v4 = vrot.slane %v661_v2, 4 }
 0x159   : > { %v666_v5 = vsel %vm299_vm0, %v664_v4, %v665_v3  ;;  %v869_v36 = vld [vmem:[#allocation3] sm:$0xf]  ;;  %v889_v38 = vld [vmem:[#allocation3 + $0x4] sm:$0xf] }
 0x15a   : > { %v668_v6 = vsel %vm304_vm1, %v661_v2, %v666_v5  ;;  %v892_v23 = vld [vmem:[#allocation3 + $0x14] sm:$0xf0]  ;;  %v879_v27 = vld [vmem:[#allocation3 + $0x18] sm:$0xf0] }
 0x15b   : > { %670 = vst [vmem:[#allocation3 + $0x20] sm:$0x33] %v668_v6  ;;  %v878_v34 = vor.u32 %v892_v23, %v877_v28  ;;  %v882_v35 = vor.u32 %v891_v32, %v879_v27 }
 0x15e   : > { %v417_v8 = vpop.permute.xlu1 %416 }
 0x15f   : > { %v420_v10 = vrot.slane %v417_v8, 4 }
 0x161   : > { %v422_v11 = vsel %vm299_vm0, %v420_v10, %v421_v9 }
 0x162   : > { %v424_v12 = vsel %vm423_vm6, %v417_v8, %v422_v11  ;;  %v676_v13 = vld [vmem:[#allocation3 + $0x20] sm:$0x33] }
 0x163   : > { %426 = vst [vmem:[#allocation3 + $0x8] sm:$0x33] %v424_v12  ;;  %v690_v14 = vunpack.c.l.b16 %v676_v13  ;;  %v691_v15 = vunpack.c.h.b16 %v676_v13 }
 0x165   : > { %v696_v17 = vpack.c.b16 %v690_v14, %v690_v14  ;;  %v697_v20 = vpack.c.b16 %v691_v15, %v691_v15 }
 0x166   : > { %v465_v22 = vpop.permute.xlu1 %464 }
 0x167   : > { %v467_v25 = vrot.slane %v465_v22, 4  ;;  %v708_v26 = vsel %vm706_vm9, %v696_v17, 0  ;;  %v711_v21 = vsel %vm706_vm9, %v697_v20, 0 }
 0x168   : > { %718 = vmatpush.bf16.msra.mxu0 %v708_v26  ;;  %731 = vmatpush.bf16.msra.mxu1 %v711_v21 }
 0x169   : > { %v468_v56 = vsel %vm299_vm0, %v466_v24, %v467_v25 }
 0x16a   : > { %v470_v33 = vsel %vm469_vm5, %v463_v16, %v468_v56 }
 0x16b   : > { %472 = vst [vmem:[#allocation3 + $0x8] sm:$0xcc] %v470_v33 }
 0x16c   : > { %719 = vmatpush.bf16.msra.mxu0 %v878_v34  ;;  %732 = vmatpush.bf16.msra.mxu1 %v882_v35 }
 0x172   : > { %v890_v37 = vld [vmem:[#allocation3 + $0x4] sm:$0xf0]  ;;  %v871_v18 = vld [vmem:[#allocation3 + $0x8] sm:$0xf0] }
 0x173   : > { %v870_v19 = vor.u32 %v890_v37, %v869_v36  ;;  %v874_v39 = vor.u32 %v889_v38, %v871_v18 }
 0x175   : > { %720 = vmatpush.bf16.msra.mxu0 %v870_v19  ;;  %733 = vmatpush.bf16.msra.mxu1 %v874_v39 }
 0x178   : > { %883 = vmatmul.msk.bf16.vlgmr.msra.gmra.mxu0 %vm702_vm10, %v671_v41  ;;  %884 = vmatmul.msk.bf16.vlgmr.msra.gmra.mxu1 %vm702_vm10, %v671_v41 }
 0x1f5   : > { %v722_v42 = vpop.f32.mrf.mxu0  ;;  %v735_v29 = vpop.f32.mrf.mxu1 }
 0x1f6   : > { %v754_v30 = vmul.f32 %v722_v42, %v722_v42  ;;  %v739_v43 = vpack.c.bf16 %v735_v29, %v722_v42  ;;  %v755_v40 = vmul.f32 %v735_v29, %v735_v29  ;;  %v747_v44 = vsel %vm299_vm0, %v722_v42, 0.0 }
 0x1f7   : > { %v748_v45 = vsel %vm299_vm0, %v735_v29, 0.0 }
 0x1f8   : > { %v741_v31 = vrot.slane %v739_v43, 2  ;;  %v749_v46 = vadd.f32 %v748_v45, %v747_v44  ;;  %v756_v47 = vsel %vm299_vm0, %v754_v30, 0.0  ;;  %v757_v48 = vsel %vm299_vm0, %v755_v40, 0.0 }
 0x1f9   : > { %v758_v49 = vadd.f32 %v757_v48, %v756_v47 }
 0x1fa   : > { %v744_v50 = vsel %vm706_vm9, %v739_v43, %v741_v31  ;;  %750 = vadd.xlane.f32.xlu2 %v749_v46 }
 0x1fb   : > { %746 = vst [vmem:[%s258_s14] sm:$0xf] %v744_v50  ;;  %759 = vadd.xlane.f32.xlu0 %v758_v49 }
 0x1fd   : > { %v724_v51 = vpop.f32.mrf.mxu0  ;;  %v737_v52 = vpop.f32.mrf.mxu1 }
 0x26d   : > { %v751_v53 = vpop.xlane.xlu2 %750 }
 0x26e   : > { %753 = vst.msk [vmem:[%s262_s17] sm:$0xf] %vm752_vm11, %v751_v53  ;;  %v760_v54 = vpop.xlane.xlu0 %759 }
 0x26f   : > { %762 = vst.msk [vmem:[%s262_s17] sm:$0xf] %vm761_vm12, %v760_v54 }
 0x270 PF: > { %s17_s21 = sadd.s32 1, %s919_s21  }
 0x271   : > { %p14_p4 = scmp.ge.s32.totalorder %s17_s21, 4  }
 0x273   :  { %16 = sbr.rel (!%p14_p4) target bundleno = 1 (0x1), region = 98 }

// kernel: basic_block_forward.3
= control target key start
LH: loop header
LB: loop body
LE: loop exit
PB: predicated region body
PF: predicated region fallthrough
CT: control target
= control target key end

     0   :  { %s874_s15 = smov 0   ;;  %s1040_s0 = inlined_call_operand.vmem [shape: f32[2,4,256], index: 0, kind: input, shape index: {}]   ;;  %s1041_s1 = inlined_call_operand.vmem [shape: bf16[4,36], index: 1, kind: input, shape index: {}]   ;;  %s1042_s2 = inlined_call_operand.vmem [shape: f32[9,256], index: 2, kind: input, shape index: {}]   ;;  %s1043_s3 = inlined_call_operand.vmem [shape: bf16[2,4,256], index: 3, kind: output, shape index: {0}]   ;;  %s1044_s4 = inlined_call_operand.vmem [shape: f32[2,4,2], index: 4, kind: output, shape index: {1}]  }
   0x1 LB: > { %s771_s16 = sadd.s32 4294967295, %s838_s15   ;;  %p775_p0 = scmp.ge.s32.totalorder %s838_s15, 1  ;;  %s838_s15 = sphi %s874_s15, %s15_s15  }
   0x2   : > { %p165_p1 = scmp.lt.s32.totalorder %s838_s15, 3 }
   0x4   : > { %p166_p2 = pnand %p775_p0, %p165_p1 }
   0x5   : > { %s840_s25 = smov (!%p166_p2), 111   ;;  %s841_s28 = smov (!%p166_p2), 113  }
   0x6   : > { %169 = sbr.rel (%p166_p2) target bundleno = 607 (0x25f), region = 32  ;;  %s842_s9 = smov (!%p166_p2), 1  }
   0x7   : > { %s843_s10 = smov (!%p166_p2), 112   ;;  %s844_s11 = smov (!%p166_p2), 127  }
   0x8   : > { %s845_s12 = smov (!%p166_p2), 15   ;;  %s846_s13 = smov (!%p166_p2), 16  }
   0x9   : > { %s847_s14 = smov (!%p166_p2), 17   ;;  %p195_p3 = scmp.lt.s32.totalorder (!%p166_p2), %s771_s16, 1 }
   0xb   : > { %v216_v0 = vld [vmem:[%s1042_s2] ss:$8 sm:$0x3]  ;;  %v781_v3 = vld [vmem:[%s1042_s2 + $0x1] ss:$8 sm:$0x3] }
   0xc   : > { %v218_v1 = vperm.slane %v216_v0, 0  ;;  %v219_v2 = vperm.slane %v216_v0, 1  ;;  %vm221_vm0 = vcmask 1043456   ;;  %v265_v4 = vperm.slane %v781_v3, 1  ;;  %s1046_s16 = smov (!%p195_p3, %s771_s16), 1 }
   0xd   : > { %v782_v5 = vld [vmem:[%s1042_s2 + $0x2] ss:$8 sm:$0x3]  ;;  %v783_v9 = vld [vmem:[%s1042_s2 + $0x3] ss:$8 sm:$0x3] }
   0xe   : > { %v220_v6 = vrot.slane %v219_v2, 4  ;;  %v310_v7 = vperm.slane %v782_v5, 0  ;;  %v311_v8 = vperm.slane %v782_v5, 1  ;;  %v355_v12 = vperm.slane %v783_v9, 1  ;;  %s809_s17 = sshll.u32 %s1046_s16, 3 }
   0xf   : > { %v264_v13 = vperm.slane %v781_v3, 0  ;;  %v785_v14 = vld [vmem:[%s1042_s2 + $0x5] ss:$8 sm:$0x3]  ;;  %v266_v15 = vrot.slane %v265_v4, 4  ;;  %v354_v21 = vperm.slane %v783_v9, 0  ;;  %s199_s20 = scalar_lea.vmem %s1040_s0, %s809_s17 }
  0x10   : > { %v222_v10 = vsel %vm221_vm0, %v218_v1, %v220_v6  ;;  %v312_v11 = vrot.slane %v311_v8, 4  ;;  %v418_v17 = vperm.slane %v785_v14, 0  ;;  %v419_v18 = vperm.slane %v785_v14, 1  ;;  %v787_v19 = vld [vmem:[%s1042_s2 + $0x7] ss:$8 sm:$0x3] }
  0x11   : > { %223 = vrot.lane.b32.xlu0 %v222_v10, %s840_s25  ;;  %v786_v20 = vld [vmem:[%s1042_s2 + $0x6] ss:$8 sm:$0x3]  ;;  %v356_v22 = vrot.slane %v355_v12, 4  ;;  %v267_v26 = vsel %vm221_vm0, %v264_v13, %v266_v15  ;;  %v509_v27 = vperm.slane %v787_v19, 1  ;;  %v508_v33 = vperm.slane %v787_v19, 0 }
  0x12   : > { %v313_v16 = vsel %vm221_vm0, %v310_v7, %v312_v11  ;;  %v420_v23 = vrot.slane %v419_v18, 4  ;;  %v465_v24 = vperm.slane %v786_v20, 1  ;;  %v788_v25 = vld [vmem:[%s1042_s2 + $0x10] ss:$8 sm:$0x3]  ;;  %v464_v31 = vperm.slane %v786_v20, 0 }
  0x13   : > { %314 = vrot.lane.b32.xlu1 %v313_v16, %s841_s28  ;;  %v357_v29 = vsel %vm221_vm0, %v354_v21, %v356_v22  ;;  %v555_v30 = vperm.slane %v788_v25, 1  ;;  %v510_v34 = vrot.slane %v509_v27, 4  ;;  %v554_v35 = vperm.slane %v788_v25, 0  ;;  %v932_v40 = vld [vmem:[%s199_s20] sm:$0xff] }
  0x14   : > { %v421_v28 = vsel %vm221_vm0, %v418_v17, %v420_v23  ;;  %v466_v32 = vrot.slane %v465_v24, 4  ;;  %v848_v41 = vmov 0.0   ;;  %vm226_vm1 = vcmask 908288   ;;  %v784_v2 = vld [vmem:[%s1042_s2 + $0x4] ss:$8 sm:$0x3] }
  0x15   : > { %422 = vrot.lane.b32.xlu2 %v421_v28, %s842_s9  ;;  %v556_v36 = vrot.slane %v555_v30, 4  ;;  %v511_v38 = vsel %vm221_vm0, %v508_v33, %v510_v34  ;;  %211 = vst [vmem:[#allocation2] sm:$0xff] %v848_v41  ;;  %vm271_vm2 = vcmask 916480   ;;  %vm317_vm3 = vcmask 924672  }
  0x16   : > { %v467_v37 = vsel %vm221_vm0, %v464_v31, %v466_v32  ;;  %212 = vst [vmem:[#allocation2 + $0x8] sm:$0xff] %v848_v41  ;;  %vm361_vm4 = vcmask 1039360   ;;  %v400_v8 = vperm.slane %v784_v2, 1  ;;  %v399_v12 = vperm.slane %v784_v2, 0 }
  0x17   : > { %v557_v39 = vsel %vm221_vm0, %v554_v35, %v556_v36  ;;  %213 = vst [vmem:[#allocation2 + $0x4] sm:$0xff] %v932_v40  ;;  %vm391_vm5 = vcmask 7168   ;;  %vm345_vm6 = vcmask 121856   ;;  %vm301_vm7 = vcmask 130048  }
  0x18   : > { %v401_v13 = vrot.slane %v400_v8, 4  ;;  %vm255_vm8 = vcmask 138240   ;;  %vm628_vm9 = vcmask 1041408   ;;  %vm624_vm10 = vcmask 293888  }
  0x19   : > { %268 = vrot.lane.b32.xlu0 %v267_v26, %s843_s10  ;;  %vm674_vm11 = vcmask 3072   ;;  %vm683_vm12 = vcmask 11272  }
  0x1a   : > { %v402_v19 = vsel %vm221_vm0, %v399_v12, %v401_v13 }
  0x1b   : > { %358 = vrot.lane.b32.xlu1 %v357_v29, %s844_s11  ;;  %v404_v22 = vmul.f32 %v402_v19, %v932_v40 }
  0x1d   : > { %468 = vrot.lane.b32.xlu2 %v467_v37, %s845_s12  ;;  %v414_v21 = vld [vmem:[#allocation2 + $0xc] sm:$0xf] }
  0x1e   : > { %v215_v43 = vld [vmem:[#allocation2 + $0x8] sm:$0xf]  ;;  %v214_v44 = vld [vmem:[#allocation2] sm:$0xff]  ;;  %v460_v29 = vld [vmem:[#allocation2 + $0xc] sm:$0xf] }
  0x1f   : > { %v260_v51 = vld [vmem:[#allocation2 + $0x8] sm:$0xf] }
  0x20   : > { %v306_v62 = vld [vmem:[#allocation2 + $0x8] sm:$0xf] }
  0x21   : > { %512 = vrot.lane.b32.xlu0 %v511_v38, %s846_s13  ;;  %v350_v9 = vld [vmem:[#allocation2 + $0x8] sm:$0xf]  ;;  %v504_v38 = vld [vmem:[#allocation2 + $0xc] sm:$0xf] }
  0x23   : > { %558 = vrot.lane.b32.xlu1 %v557_v39, %s847_s14 }
  0x6f   : > { %v423_v11 = vpop.permute.xlu2 %422 }
  0x70   : > { %v424_v20 = vrot.slane %v423_v11, 4 }
  0x72   : > { %v430_v23 = vmul.f32 %v424_v20, %v414_v21  ;;  %v426_v30 = vsel %vm391_vm5, %v424_v20, %v423_v11 }
  0x73   : > { %v429_v32 = vmul.f32 %v426_v30, %v932_v40 }
  0x77   : > { %v469_v24 = vpop.permute.xlu2 %468 }
  0x78   : > { %v470_v28 = vrot.slane %v469_v24, 4 }
  0x7a   : > { %v476_v31 = vmul.f32 %v470_v28, %v460_v29  ;;  %v472_v39 = vsel %vm345_vm6, %v470_v28, %v469_v24 }
  0x83   : > { %v224_v42 = vpop.permute.xlu0 %223 }
  0x84   : > { %v225_v45 = vrot.slane %v224_v42, 4 }
  0x85   : > { %v315_v49 = vpop.permute.xlu1 %314 }
  0x86   : > { %v227_v46 = vsel %vm226_vm1, %v225_v45, %v224_v42  ;;  %v231_v47 = vmul.f32 %v225_v45, %v215_v43  ;;  %v316_v57 = vrot.slane %v315_v49, 4 }
  0x87   : > { %v230_v48 = vmul.f32 %v227_v46, %v214_v44 }
  0x88   : > { %236 = vst [vmem:[#allocation1 + $0x10] ss:$2 sm:$0xff] %v231_v47  ;;  %v318_v63 = vsel %vm317_vm3, %v316_v57, %v315_v49  ;;  %v322_v1 = vmul.f32 %v316_v57, %v306_v62 }
  0x89   : > { %234 = vst [vmem:[#allocation1] ss:$2 sm:$0xff] %v230_v48  ;;  %v321_v3 = vmul.f32 %v318_v63, %v214_v44 }
  0x8b   : > { %v269_v50 = vpop.permute.xlu0 %268 }
  0x8c   : > { %v270_v52 = vrot.slane %v269_v50, 4 }
  0x8d   : > { %v359_v0 = vpop.permute.xlu1 %358 }
  0x8e   : > { %v272_v53 = vsel %vm271_vm2, %v270_v52, %v269_v50  ;;  %v276_v54 = vmul.f32 %v270_v52, %v260_v51  ;;  %v360_v4 = vrot.slane %v359_v0, 4  ;;  %v550_v50 = vld [vmem:[#allocation2 + $0xc] sm:$0xf] }
  0x8f   : > { %v239_v55 = vld.sshfl [vmem:[#allocation1 + $0x10] sm:$0xff pattern:$0x75316420]  ;;  %v275_v56 = vmul.f32 %v272_v53, %v214_v44 }
  0x90   : > { %v237_v58 = vld.sshfl [vmem:[#allocation1] sm:$0xff pattern:$0x75316420]  ;;  %v238_v59 = vld.sshfl [vmem:[#allocation1 + $0x8] sm:$0xff pattern:$0x75316420]  ;;  %v244_v60 = vpack.c.bf16 %v239_v55, %v239_v55  ;;  %v362_v10 = vsel %vm361_vm4, %v360_v4, %v359_v0  ;;  %v366_v14 = vmul.f32 %v360_v4, %v350_v9 }
  0x91   : > { %279 = vst [vmem:[#allocation1] ss:$2 sm:$0xff] %v275_v56  ;;  %v243_v61 = vpack.c.bf16 %v238_v59, %v237_v58  ;;  %v365_v15 = vmul.f32 %v362_v10, %v214_v44  ;;  %v475_v44 = vmul.f32 %v472_v39, %v932_v40 }
  0x92   : > { %281 = vst [vmem:[#allocation1 + $0x10] ss:$2 sm:$0xff] %v276_v54  ;;  %249 = vrot.lane.b32.xlu2 %v244_v60, %s847_s14 }
  0x93   : > { %247 = vrot.lane.b32.xlu1 %v243_v61, %s847_s14  ;;  %v513_v36 = vpop.permute.xlu0 %512 }
  0x94   : > { %v514_v41 = vrot.slane %v513_v36, 4 }
  0x95   : > { %v559_v48 = vpop.permute.xlu1 %558 }
  0x96   : > { %v520_v43 = vmul.f32 %v514_v41, %v504_v38  ;;  %v516_v51 = vsel %vm301_vm7, %v514_v41, %v513_v36  ;;  %v560_v52 = vrot.slane %v559_v48, 4 }
  0x97   : > { %v519_v55 = vmul.f32 %v516_v51, %v932_v40 }
  0x98   : > { %v943_v5 = vld.sshfl [vmem:[#allocation1] sm:$0xff pattern:$0x75316420]  ;;  %v945_v6 = vld.sshfl [vmem:[#allocation1 + $0x8] sm:$0xff pattern:$0x75316420]  ;;  %v566_v53 = vmul.f32 %v560_v52, %v550_v50  ;;  %v562_v60 = vsel %vm255_vm8, %v560_v52, %v559_v48 }
  0x99   : > { %v947_v7 = vld.sshfl [vmem:[#allocation1 + $0x10] sm:$0xff pattern:$0x75316420]  ;;  %325 = vst [vmem:[#allocation1] ss:$2 sm:$0xff] %v321_v3  ;;  %v565_v63 = vmul.f32 %v562_v60, %v932_v40 }
  0x9a   : > { %327 = vst [vmem:[#allocation1 + $0x10] ss:$2 sm:$0xff] %v322_v1  ;;  %v289_v0 = vpack.c.bf16 %v947_v7, %v947_v7 }
  0x9c   : > { %v293_v8 = vrot.slane %v289_v0, 6 }
  0xa0   : > { %v950_v16 = vld.sshfl [vmem:[#allocation1] sm:$0xff pattern:$0x75316420]  ;;  %v952_v17 = vld.sshfl [vmem:[#allocation1 + $0x8] sm:$0xff pattern:$0x75316420] }
  0xa1   : > { %v954_v18 = vld.sshfl [vmem:[#allocation1 + $0x10] sm:$0xff pattern:$0x75316420]  ;;  %369 = vst [vmem:[#allocation1] ss:$2 sm:$0xff] %v365_v15  ;;  %v288_v15 = vpack.c.bf16 %v945_v6, %v943_v5  ;;  %v334_v20 = vpack.c.bf16 %v952_v17, %v950_v16 }
  0xa2   : > { %371 = vst [vmem:[#allocation1 + $0x10] ss:$2 sm:$0xff] %v366_v14 }
  0xa3   : > { %v292_v19 = vrot.slane %v288_v15, 6 }
  0xa8   : > { %v958_v25 = vld.sshfl [vmem:[#allocation1] sm:$0xff pattern:$0x75316420]  ;;  %v960_v26 = vld.sshfl [vmem:[#allocation1 + $0x8] sm:$0xff pattern:$0x75316420] }
  0xa9   : > { %406 = vst [vmem:[#allocation1] ss:$2 sm:$0xff] %v404_v22  ;;  %v962_v27 = vld.sshfl [vmem:[#allocation1 + $0x10] sm:$0xff pattern:$0x75316420]  ;;  %v378_v40 = vpack.c.bf16 %v960_v26, %v958_v25  ;;  %v335_v22 = vpack.c.bf16 %v954_v18, %v954_v18 }
  0xaa   : > { %435 = vst [vmem:[#allocation1 + $0x10] ss:$2 sm:$0xff] %v430_v23  ;;  %v379_v21 = vpack.c.bf16 %v962_v27, %v962_v27 }
  0xab   : > { %v382_v13 = vrot.slane %v378_v40, 6 }
  0xac   : > { %v383_v23 = vrot.slane %v379_v21, 6 }
  0xb0   : > { %v966_v33 = vld.sshfl [vmem:[#allocation1] sm:$0xff pattern:$0x75316420]  ;;  %v968_v34 = vld.sshfl [vmem:[#allocation1 + $0x8] sm:$0xff pattern:$0x75316420] }
  0xb1   : > { %v438_v35 = vld.sshfl [vmem:[#allocation1 + $0x10] sm:$0xff pattern:$0x75316420]  ;;  %433 = vst [vmem:[#allocation1] ss:$2 sm:$0xff] %v429_v32  ;;  %v411_v17 = vpack.c.bf16 %v968_v34, %v966_v33 }
  0xb2   : > { %481 = vst [vmem:[#allocation1 + $0x10] ss:$2 sm:$0xff] %v476_v31  ;;  %v443_v37 = vpack.c.bf16 %v438_v35, %v438_v35 }
  0xb3   : > { %412 = vst [vmem:[#allocation3 + $0x10] sm:$0x33] %v411_v17 }
  0xb4   : > { %v447_v42 = vrot.slane %v443_v37, 6 }
  0xb6   : > { %450 = vrot.lane.b32.xlu2 %v447_v42, %s844_s11 }
  0xb8   : > { %v436_v45 = vld.sshfl [vmem:[#allocation1] sm:$0xff pattern:$0x75316420]  ;;  %v437_v46 = vld.sshfl [vmem:[#allocation1 + $0x8] sm:$0xff pattern:$0x75316420] }
  0xb9   : > { %v484_v47 = vld.sshfl [vmem:[#allocation1 + $0x10] sm:$0xff pattern:$0x75316420]  ;;  %479 = vst [vmem:[#allocation1] ss:$2 sm:$0xff] %v475_v44  ;;  %v442_v54 = vpack.c.bf16 %v437_v46, %v436_v45 }
  0xba   : > { %v489_v49 = vpack.c.bf16 %v484_v47, %v484_v47  ;;  %525 = vst [vmem:[#allocation1 + $0x10] ss:$2 sm:$0xff] %v520_v43 }
  0xbb   : > { %v446_v61 = vrot.slane %v442_v54, 6 }
  0xbc   : > { %494 = vrot.lane.b32.xlu1 %v489_v49, %s841_s28 }
  0xc0   : > { %v482_v56 = vld.sshfl [vmem:[#allocation1] sm:$0xff pattern:$0x75316420]  ;;  %v483_v57 = vld.sshfl [vmem:[#allocation1 + $0x8] sm:$0xff pattern:$0x75316420] }
  0xc1   : > { %v488_v58 = vpack.c.bf16 %v483_v57, %v482_v56  ;;  %523 = vst [vmem:[#allocation1] ss:$2 sm:$0xff] %v519_v55  ;;  %v528_v59 = vld.sshfl [vmem:[#allocation1 + $0x10] sm:$0xff pattern:$0x75316420] }
  0xc2   : > { %571 = vst [vmem:[#allocation1 + $0x10] ss:$2 sm:$0xff] %v566_v53  ;;  %v533_v62 = vpack.c.bf16 %v528_v59, %v528_v59 }
  0xc3   : > { %492 = vrot.lane.b32.xlu0 %v488_v58, %s841_s28 }
  0xc4   : > { %448 = vrot.lane.b32.xlu1 %v446_v61, %s844_s11  ;;  %v537_v1 = vrot.slane %v533_v62, 6 }
  0xc8   : > { %v526_v2 = vld.sshfl [vmem:[#allocation1] sm:$0xff pattern:$0x75316420]  ;;  %v527_v3 = vld.sshfl [vmem:[#allocation1 + $0x8] sm:$0xff pattern:$0x75316420] }
  0xc9   : > { %v532_v4 = vpack.c.bf16 %v527_v3, %v526_v2  ;;  %569 = vst [vmem:[#allocation1] ss:$2 sm:$0xff] %v565_v63  ;;  %v574_v10 = vld.sshfl [vmem:[#allocation1 + $0x10] sm:$0xff pattern:$0x75316420] }
  0xca   : > { %v579_v11 = vpack.c.bf16 %v574_v10, %v574_v10 }
  0xcb   : > { %540 = vrot.lane.b32.xlu0 %v537_v1, %s843_s10  ;;  %v536_v9 = vrot.slane %v532_v4, 6 }
  0xcc   : > { %296 = vrot.lane.b32.xlu1 %v293_v8, %s846_s13 }
  0xcd   : > { %538 = vrot.lane.b32.xlu2 %v536_v9, %s843_s10 }
  0xd0   : > { %v572_v12 = vld.sshfl [vmem:[#allocation1] sm:$0xff pattern:$0x75316420]  ;;  %v573_v7 = vld.sshfl [vmem:[#allocation1 + $0x8] sm:$0xff pattern:$0x75316420] }
  0xd1   : > { %v578_v14 = vpack.c.bf16 %v573_v7, %v572_v12 }
  0xd3   : > { %584 = vrot.lane.b32.xlu0 %v579_v11, %s840_s25 }
  0xd4   : > { %384 = vrot.lane.b32.xlu1 %v382_v13, %s842_s9 }
  0xd5   : > { %582 = vrot.lane.b32.xlu2 %v578_v14, %s840_s25  ;;  %s810_s25 = sshll.u32 %s1046_s16, 2 }
  0xd6   : > { %s204_s28 = scalar_lea.vmem %s1043_s3, %s810_s25  ;;  %s208_s30 = scalar_lea.vmem %s1044_s4, %s810_s25 }
  0xdb   : > { %294 = vrot.lane.b32.xlu0 %v292_v19, %s846_s13 }
  0xdd   : > { %338 = vrot.lane.b32.xlu2 %v334_v20, %s845_s12 }
  0xe3   : > { %340 = vrot.lane.b32.xlu0 %v335_v22, %s845_s12 }
  0xe5   : > { %386 = vrot.lane.b32.xlu2 %v383_v23, %s842_s9 }
  0xec   : > { %v250_v5 = vpop.permute.xlu2 %249 }
  0xed   : > { %v252_v24 = vrot.slane %v250_v5, 4 }
 0x105   : > { %v248_v6 = vpop.permute.xlu1 %247 }
 0x106   : > { %v251_v25 = vrot.slane %v248_v6, 4 }
 0x108   : > { %v254_v26 = vsel %vm221_vm0, %v251_v25, %v252_v24 }
 0x109   : > { %v256_v16 = vsel %vm255_vm8, %v248_v6, %v254_v26  ;;  %v593_v26 = vld [vmem:[%s1041_s1] sm:$0x3] }
 0x10a   : > { %258 = vst [vmem:[#allocation3] sm:$0x33] %v256_v16 }
 0x110   : > { %v451_v27 = vpop.permute.xlu2 %450 }
 0x111   : > { %v453_v36 = vrot.slane %v451_v27, 4 }
 0x127   : > { %v539_v18 = vpop.permute.xlu2 %538 }
 0x128   : > { %v542_v43 = vrot.slane %v539_v18, 4 }
 0x12e   : > { %v495_v28 = vpop.permute.xlu1 %494 }
 0x12f   : > { %v583_v29 = vpop.permute.xlu2 %582  ;;  %v497_v31 = vrot.slane %v495_v28, 4 }
 0x130   : > { %v586_v50 = vrot.slane %v583_v29, 4 }
 0x135   : > { %v493_v30 = vpop.permute.xlu0 %492 }
 0x136   : > { %v449_v32 = vpop.permute.xlu1 %448  ;;  %v496_v35 = vrot.slane %v493_v30, 4 }
 0x137   : > { %v452_v37 = vrot.slane %v449_v32, 4  ;;  %v339_v33 = vpop.permute.xlu2 %338 }
 0x138   : > { %v498_v38 = vsel %vm221_vm0, %v496_v35, %v497_v31  ;;  %v342_v10 = vrot.slane %v339_v33, 4 }
 0x139   : > { %v454_v39 = vsel %vm221_vm0, %v452_v37, %v453_v36  ;;  %v500_v41 = vsel %vm317_vm3, %v493_v30, %v498_v38 }
 0x13a   : > { %v456_v42 = vsel %vm361_vm4, %v449_v32, %v454_v39  ;;  %502 = vst [vmem:[#allocation3 + $0x18] sm:$0x33] %v500_v41 }
 0x13b   : > { %458 = vst [vmem:[#allocation3 + $0x10] sm:$0xcc] %v456_v42 }
 0x13d   : > { %v541_v34 = vpop.permute.xlu0 %540 }
 0x13e   : > { %v297_v44 = vpop.permute.xlu1 %296  ;;  %v543_v45 = vrot.slane %v541_v34, 4 }
 0x13f   : > { %v387_v48 = vpop.permute.xlu2 %386  ;;  %v299_v60 = vrot.slane %v297_v44, 4 }
 0x140   : > { %v544_v46 = vsel %vm221_vm0, %v542_v43, %v543_v45  ;;  %v389_v53 = vrot.slane %v387_v48, 4 }
 0x141   : > { %v546_v47 = vsel %vm271_vm2, %v539_v18, %v544_v46 }
 0x142   : > { %548 = vst [vmem:[#allocation3 + $0x18] sm:$0xcc] %v546_v47  ;;  %v799_v14 = vld [vmem:[#allocation3 + $0x10] sm:$0xf]  ;;  %v813_v15 = vld [vmem:[#allocation3 + $0x14] sm:$0xf] }
 0x145   : > { %v585_v49 = vpop.permute.xlu0 %584 }
 0x146   : > { %v385_v51 = vpop.permute.xlu1 %384  ;;  %v587_v52 = vrot.slane %v585_v49, 4 }
 0x147   : > { %v388_v54 = vrot.slane %v385_v51, 4 }
 0x148   : > { %v588_v55 = vsel %vm221_vm0, %v586_v50, %v587_v52 }
 0x149   : > { %v390_v56 = vsel %vm221_vm0, %v388_v54, %v389_v53  ;;  %v590_v57 = vsel %vm226_vm1, %v583_v29, %v588_v55  ;;  %v814_v9 = vld [vmem:[#allocation3 + $0x14] sm:$0xf0]  ;;  %v801_v7 = vld [vmem:[#allocation3 + $0x18] sm:$0xf0] }
 0x14a   : > { %v392_v58 = vsel %vm391_vm5, %v385_v51, %v390_v56  ;;  %592 = vst [vmem:[#allocation3 + $0x20] sm:$0x33] %v590_v57  ;;  %v800_v20 = vor.u32 %v814_v9, %v799_v14  ;;  %v804_v21 = vor.u32 %v813_v15, %v801_v7 }
 0x14b   : > { %394 = vst [vmem:[#allocation3 + $0x8] sm:$0xcc] %v392_v58 }
 0x14d   : > { %v295_v59 = vpop.permute.xlu0 %294 }
 0x14e   : > { %v298_v61 = vrot.slane %v295_v59, 4 }
 0x150   : > { %v300_v62 = vsel %vm221_vm0, %v298_v61, %v299_v60 }
 0x151   : > { %v302_v63 = vsel %vm301_vm7, %v295_v59, %v300_v62  ;;  %v598_v0 = vld [vmem:[#allocation3 + $0x20] sm:$0x33] }
 0x152   : > { %304 = vst [vmem:[#allocation3] sm:$0xcc] %v302_v63  ;;  %v612_v1 = vunpack.c.l.b16 %v598_v0  ;;  %v613_v2 = vunpack.c.h.b16 %v598_v0 }
 0x154   : > { %v618_v3 = vpack.c.b16 %v612_v1, %v612_v1  ;;  %v619_v4 = vpack.c.b16 %v613_v2, %v613_v2 }
 0x155   : > { %v341_v8 = vpop.permute.xlu0 %340 }
 0x156   : > { %v343_v40 = vrot.slane %v341_v8, 4  ;;  %v630_v11 = vsel %vm628_vm9, %v618_v3, 0  ;;  %v633_v12 = vsel %vm628_vm9, %v619_v4, 0 }
 0x157   : > { %640 = vmatpush.bf16.msra.mxu0 %v630_v11  ;;  %653 = vmatpush.bf16.msra.mxu1 %v633_v12 }
 0x158   : > { %v344_v13 = vsel %vm221_vm0, %v342_v10, %v343_v40 }
 0x159   : > { %v346_v19 = vsel %vm345_vm6, %v339_v33, %v344_v13  ;;  %v791_v22 = vld [vmem:[#allocation3] sm:$0xf]  ;;  %v811_v5 = vld [vmem:[#allocation3 + $0x4] sm:$0xf] }
 0x15a   : > { %348 = vst [vmem:[#allocation3 + $0x8] sm:$0x33] %v346_v19 }
 0x15b   : > { %641 = vmatpush.bf16.msra.mxu0 %v800_v20  ;;  %654 = vmatpush.bf16.msra.mxu1 %v804_v21 }
 0x161   : > { %v812_v23 = vld [vmem:[#allocation3 + $0x4] sm:$0xf0]  ;;  %v793_v6 = vld [vmem:[#allocation3 + $0x8] sm:$0xf0] }
 0x162   : > { %v792_v24 = vor.u32 %v812_v23, %v791_v22  ;;  %v796_v25 = vor.u32 %v811_v5, %v793_v6 }
 0x164   : > { %642 = vmatpush.bf16.msra.mxu0 %v792_v24  ;;  %655 = vmatpush.bf16.msra.mxu1 %v796_v25 }
 0x167   : > { %805 = vmatmul.msk.bf16.vlgmr.msra.gmra.mxu0 %vm624_vm10, %v593_v26  ;;  %806 = vmatmul.msk.bf16.vlgmr.msra.gmra.mxu1 %vm624_vm10, %v593_v26 }
 0x1e4   : > { %v644_v16 = vpop.f32.mrf.mxu0  ;;  %v657_v17 = vpop.f32.mrf.mxu1 }
 0x1e5   : > { %v676_v27 = vmul.f32 %v644_v16, %v644_v16  ;;  %v661_v18 = vpack.c.bf16 %v657_v17, %v644_v16  ;;  %v677_v28 = vmul.f32 %v657_v17, %v657_v17  ;;  %v669_v29 = vsel %vm221_vm0, %v644_v16, 0.0 }
 0x1e6   : > { %v670_v30 = vsel %vm221_vm0, %v657_v17, 0.0 }
 0x1e7   : > { %v663_v31 = vrot.slane %v661_v18, 2  ;;  %v671_v32 = vadd.f32 %v670_v30, %v669_v29  ;;  %v678_v35 = vsel %vm221_vm0, %v676_v27, 0.0  ;;  %v679_v36 = vsel %vm221_vm0, %v677_v28, 0.0 }
 0x1e8   : > { %v680_v37 = vadd.f32 %v679_v36, %v678_v35 }
 0x1e9   : > { %672 = vadd.xlane.f32.xlu0 %v671_v32  ;;  %v666_v38 = vsel %vm628_vm9, %v661_v18, %v663_v31 }
 0x1ea   : > { %681 = vadd.xlane.f32.xlu1 %v680_v37  ;;  %668 = vst [vmem:[%s204_s28] sm:$0xf] %v666_v38 }
 0x1ec   : > { %v646_v39 = vpop.f32.mrf.mxu0  ;;  %v659_v41 = vpop.f32.mrf.mxu1 }
 0x25c   : > { %v673_v42 = vpop.xlane.xlu0 %672 }
 0x25d   : > { %675 = vst.msk [vmem:[%s208_s30] sm:$0xf] %vm674_vm11, %v673_v42  ;;  %v682_v33 = vpop.xlane.xlu1 %681 }
 0x25e   : > { %684 = vst.msk [vmem:[%s208_s30] sm:$0xf] %vm683_vm12, %v682_v33 }
 0x25f PF: > { %s15_s15 = sadd.s32 1, %s838_s15  }
 0x260   : > { %p12_p4 = scmp.ge.s32.totalorder %s15_s15, 4  }
 0x262   :  { %14 = sbr.rel (!%p12_p4) target bundleno = 1 (0x1), region = 90 }

</bundles_post_ra>
